<compile_context>
chip_gen: v7x
topology: tpu7x:2x2x1
jax: 0.10.0
libtpu: 0.0.40
codegen_flags: <defaults>
</compile_context>

<pallas_src>
import numpy as np

import jax
import jax.numpy as jnp
from jax import lax
from jax.experimental import pallas as pl
from jax.experimental.pallas import tpu as pltpu

LN_EPS = 1e-5
_INV_SQRT2 = 0.7071067811865476


def _round_up(x, m):
    return ((x + m - 1) // m) * m


def _cdiv(a, b):
    return (a + b - 1) // b


def _make_kernel(TR, Wk, Cin, Cinner, Cinnerp, Coutp, approximate_gelu):
    """Fused body for one (batch, row-tile) grid point."""
    tokens = TR * Wk
    inv_c = 1.0 / float(Cinner)

    def kernel(xm_ref, xh_ref, w1_ref, b1_ref, gamma_ref, beta_ref,
               w2_ref, b2_ref, o_ref):
        # Assemble the TR+2 padded rows this tile needs: TR "main" rows plus
        # the 2-row bottom halo prepared by the wrapper.
        rows = jnp.concatenate([xm_ref[0], xh_ref[0]], axis=0)   # (TR+2, Wk+2, Cin) bf16

        # In-kernel im2col: the 9 shifted taps concatenated on the lane axis.
        taps = [rows[dy:dy + TR, dx:dx + Wk, :]
                for dy in range(3) for dx in range(3)]
        patches = jnp.concatenate(taps, axis=-1)                 # (TR, Wk, 9*Cin)
        patches = patches.reshape(tokens, 9 * Cin)               # bf16, Wk % 8 == 0

        # 3x3 conv == one K = 9*Cin MXU matmul with f32 accumulation.
        h = jnp.dot(patches, w1_ref[...],
                    preferred_element_type=jnp.float32)          # (tokens, Cinnerp)
        h = h + b1_ref[...]

        # One-pass LayerNorm over the true Cinner channels.  Padded channels of
        # h are exactly 0 (zero weight columns / zero bias), so summing over the
        # padded lane width equals summing over Cinner.
        s1 = jnp.sum(h, axis=-1, keepdims=True)
        s2 = jnp.sum(h * h, axis=-1, keepdims=True)
        mean = s1 * inv_c
        var = s2 * inv_c - mean * mean
        h = (h - mean) * lax.rsqrt(var + LN_EPS)
        # gamma/beta zero-padded -> padded lanes return to exactly 0 here.
        h = h * gamma_ref[...] + beta_ref[...]

        # GELU.  Exact erf matches torch.nn.GELU's default but burns VALU slots
        # on a long f32 polynomial; approximate_gelu=True uses tanh-GELU which
        # routes the transcendental to the otherwise-idle EUP slot (near free)
        # at a ~3e-4 numeric delta.
        if approximate_gelu:
            h = jax.nn.gelu(h, approximate=True)
        else:
            h = 0.5 * h * (1.0 + lax.erf(h * _INV_SQRT2))

        # 1x1 conv: pointwise bf16 MXU matmul + bias, bf16 store.
        y = jnp.dot(h.astype(jnp.bfloat16), w2_ref[...],
                    preferred_element_type=jnp.float32) + b2_ref[...]
        o_ref[0] = y.reshape(TR, Wk, Coutp).astype(o_ref.dtype)

    return kernel


def _pick_row_tile(N, H, Wk, Cin, Cinnerp, Coutp, budget_bytes):
    """Largest row tile whose pipelined buffers + live f32 intermediates fit."""
    Wk2 = Wk + 2
    per_row = (2 * Wk2 * Cin * 2          # double-buffered bf16 main input rows
               + Wk2 * Cin * 2            # in-kernel row-concat copy
               + Wk * 9 * Cin * 2         # bf16 im2col patches
               + 3 * Wk * Cinnerp * 4     # f32 h + LayerNorm/GELU temporaries
               + Wk * Coutp * 4           # f32 y before the store cast
               + 2 * Wk * Coutp * 2)      # double-buffered bf16 output rows
    fixed = (9 * Cin * Cinnerp * 2        # w1 (bf16)
             + Cinnerp * Coutp * 2        # w2 (bf16)
             + 2 * 2 * Wk2 * Cin * 2      # double-buffered 2-row halo
             + 8 * Cinnerp * 4)           # bias / gamma / beta vectors
    avail = max(budget_bytes - fixed, per_row)
    tr = int(max(1, min(H, avail // per_row)))
    # Keep >= 4 grid steps so software pipelining has work to hide and both
    # v7x TensorCores get a share of the (parallel x parallel) grid.
    while tr > 1 and N * _cdiv(H, tr) < 4:
        tr = _cdiv(tr, 2)
    return tr


def upernext_head_forward(x_nchw, params, upsampling_factor=1, row_tile=None,
                          approximate_gelu=False):
    N, Cin, H, W = x_nchw.shape
    x = jnp.transpose(x_nchw, (0, 2, 3, 1)).astype(jnp.float32)   # NHWC

    if upsampling_factor > 1:
        H, W = H * upsampling_factor, W * upsampling_factor
        # matches F.interpolate(mode='bilinear', align_corners=False)
        x = jax.image.resize(x, (N, H, W, Cin), method='bilinear')

    w1, b1, gamma, beta, w2, b2 = (params[k] for k in
                                   ('w1', 'b1', 'gamma', 'beta', 'w2', 'b2'))
    Cinner = w1.shape[-1]
    Cout = w2.shape[-1]

    # Lane-pad the inner dim (exact: zero-padded weights + LN dividing by the
    # true Cinner).  Only pad Cout if that is cheap (< 2x write amplification);
    # otherwise an unpadded bf16 output writes the minimal HBM bytes.
    Cinnerp = _round_up(Cinner, 128)
    Coutp128 = _round_up(Cout, 128)
    Coutp = Coutp128 if Coutp128 <= 2 * Cout else Cout

    # Sublane-align the working width; extra columns are zeros, sliced off below.
    Wk = _round_up(W, 8)
    Wk2 = Wk + 2

    # Generation-aware VMEM budget (v7x: 64 MiB per TensorCore; v5e/v6e: 128).
    try:
        info = pltpu.get_tpu_info()
        vmem_cap = int(getattr(info, "vmem_capacity_bytes", 64 * 1024 * 1024))
    except Exception:
        vmem_cap = 64 * 1024 * 1024
    budget = int(vmem_cap * 0.30)
    vmem_limit = int(vmem_cap * 0.70)

    TR = row_tile if row_tile is not None else _pick_row_tile(
        N, H, Wk, Cin, Cinnerp, Coutp, budget)
    TR = max(1, min(int(TR), H))
    numR = _cdiv(H, TR)
    Hp = numR * TR

    # Zero-padded bf16 NHWC image: 1 row/col SAME halo + alignment padding.
    # Cast BEFORE padding so the pad copy moves half the bytes.
    xb = x.astype(jnp.bfloat16)
    xp = jnp.pad(xb, ((0, 0), (1, 1 + Hp - H), (1, 1 + Wk - W), (0, 0)))
    # xp: (N, Hp+2, Wk+2, Cin)

    # 2-row bottom halo per row tile (padded rows r*TR+TR and r*TR+TR+1):
    # ~2/TR extra bytes instead of three full row-shifted copies.
    halo_idx = (np.arange(numR)[:, None] * TR + TR
                + np.arange(2)[None, :]).reshape(-1)
    x_halo = xp[:, halo_idx]                                      # (N, 2*numR, Wk2, Cin)

    # Weight prep: bf16 matmul operands, f32 everything else, zero padding.
    w1_flat = w1.reshape(9 * Cin, Cinner)
    w1p = jnp.zeros((9 * Cin, Cinnerp), jnp.float32).at[:, :Cinner].set(w1_flat)
    b1p = jnp.zeros((1, Cinnerp), jnp.float32).at[:, :Cinner].set(b1)
    gammap = jnp.zeros((1, Cinnerp), jnp.float32).at[:, :Cinner].set(gamma)
    betap = jnp.zeros((1, Cinnerp), jnp.float32).at[:, :Cinner].set(beta)
    w2p = jnp.zeros((Cinnerp, Coutp), jnp.float32).at[:Cinner, :Cout].set(w2)
    b2p = jnp.zeros((1, Coutp), jnp.float32).at[:, :Cout].set(b2)
    w1_bf = w1p.astype(jnp.bfloat16)
    w2_bf = w2p.astype(jnp.bfloat16)

    kernel = _make_kernel(TR, Wk, Cin, Cinner, Cinnerp, Coutp, approximate_gelu)
    grid = (N, numR)

    flops = 2 * N * Hp * Wk * (9 * Cin * Cinnerp + Cinnerp * Coutp + 6 * Cinnerp)
    bytes_accessed = (N * (Hp + 2 * numR) * Wk2 * Cin * 2           # main + halo reads
                      + (9 * Cin * Cinnerp + Cinnerp * Coutp) * 2   # weights
                      + N * Hp * Wk * Coutp * 2)                    # bf16 writeback
    cost = pl.CostEstimate(flops=int(flops),
                           transcendentals=int(N * Hp * Wk * Cinnerp),
                           bytes_accessed=int(bytes_accessed))

    out = pl.pallas_call(
        kernel,
        out_shape=jax.ShapeDtypeStruct((N, Hp, Wk, Coutp), jnp.bfloat16),
        grid_spec=pltpu.PrefetchScalarGridSpec(
            num_scalar_prefetch=0,
            grid=grid,
            in_specs=[
                # TR-row main block of the single zero-padded image.
                pl.BlockSpec((1, TR, Wk2, Cin), lambda n, r: (n, r, 0, 0)),
                # 2-row bottom halo for this tile.
                pl.BlockSpec((1, 2, Wk2, Cin), lambda n, r: (n, r, 0, 0)),
                # Weights / affine params: constant index maps -> fetched once.
                pl.BlockSpec((9 * Cin, Cinnerp), lambda n, r: (0, 0)),
                pl.BlockSpec((1, Cinnerp), lambda n, r: (0, 0)),
                pl.BlockSpec((1, Cinnerp), lambda n, r: (0, 0)),
                pl.BlockSpec((1, Cinnerp), lambda n, r: (0, 0)),
                pl.BlockSpec((Cinnerp, Coutp), lambda n, r: (0, 0)),
                pl.BlockSpec((1, Coutp), lambda n, r: (0, 0)),
            ],
            out_specs=pl.BlockSpec((1, TR, Wk, Coutp), lambda n, r: (n, r, 0, 0)),
        ),
        compiler_params=pltpu.CompilerParams(
            dimension_semantics=("parallel", "parallel"),
            vmem_limit_bytes=vmem_limit,
        ),
        cost_estimate=cost,
    )(xp, x_halo, w1_bf, b1p, gammap, betap, w2_bf, b2p)

    out = out[:, :H, :W, :Cout]                                   # drop padding
    return jnp.transpose(out, (0, 3, 1, 2)).astype(jnp.float32)   # NCHW f32


def init_params(key, in_channels, out_channels, init_output_bias=0.0):
    """Deterministic synthetic init mimicking the module's __init__."""
    inner = (in_channels + out_channels) // 2
    k1, k2 = jax.random.split(key)
    # trunc_normal_(std=0.02), biases zero; conv1x1 bias = init_output_bias
    w1_oihw = 0.02 * jax.random.truncated_normal(
        k1, -2.0, 2.0, (inner, in_channels, 3, 3), jnp.float32)
    # OIHW -> (ky, kx, Cin, inner) -> (9, Cin, inner): tap order matches the
    # in-kernel im2col concat order (dy-major, dx-minor, Cin innermost).
    w1 = jnp.transpose(w1_oihw, (2, 3, 1, 0)).reshape(9, in_channels, inner)
    w2_oi = 0.02 * jax.random.truncated_normal(
        k2, -2.0, 2.0, (out_channels, inner), jnp.float32)
    return dict(
        w1=w1,
        b1=jnp.zeros((1, inner), jnp.float32),
        gamma=jnp.ones((1, inner), jnp.float32),
        beta=jnp.zeros((1, inner), jnp.float32),
        w2=jnp.transpose(w2_oi, (1, 0)),
        b2=jnp.full((1, out_channels), init_output_bias, jnp.float32),
    )


def _reference_forward(x_nchw, params):
    """Pure-JAX f32 reference of the same math (upsampling_factor=1)."""
    N, Cin, H, W = x_nchw.shape
    x = jnp.transpose(x_nchw, (0, 2, 3, 1)).astype(jnp.float32)
    inner = params['w1'].shape[-1]
    w_hwio = params['w1'].reshape(3, 3, Cin, inner)
    h = lax.conv_general_dilated(
        x, w_hwio, window_strides=(1, 1), padding='SAME',
        dimension_numbers=('NHWC', 'HWIO', 'NHWC'))
    h = h + params['b1'][0]
    mean = jnp.mean(h, axis=-1, keepdims=True)
    var = jnp.mean((h - mean) ** 2, axis=-1, keepdims=True)
    h = (h - mean) * lax.rsqrt(var + LN_EPS)
    h = h * params['gamma'][0] + params['beta'][0]
    h = jax.nn.gelu(h, approximate=False)
    y = jnp.einsum('nhwc,cd->nhwd', h, params['w2']) + params['b2'][0]
    return jnp.transpose(y, (0, 3, 1, 2))


if __name__ == "__main__":
    in_channels, out_channels = 4, 8

    key = jax.random.PRNGKey(0)
    k_x, k_p = jax.random.split(key)
    x = jax.random.normal(k_x, (2, in_channels, 16, 16), jnp.float32)  # NCHW
    params = init_params(k_p, in_channels, out_channels, init_output_bias=0.0)

    # Auto row-tile picker chooses TR=8 here (>=4 grid steps), so the
    # cross-tile halo path is exercised.
    y = upernext_head_forward(x, params, upsampling_factor=1)
    y = jax.block_until_ready(y)

    y_ref = jax.block_until_ready(_reference_forward(x, params))
    assert y.shape == (2, out_channels, 16, 16)
    max_err = float(jnp.max(jnp.abs(y - y_ref)))
    # bf16 matmul operands / bf16 output with f32 accumulation: loosened tol.
    assert jnp.allclose(y, y_ref, atol=2e-2, rtol=2e-2), max_err

    print("KERNEL_OK")
</pallas_src>

<mosaic_0001>
module attributes {stable_mosaic.version = 11 : i64} {
  func.func @kernel(%arg0: i32, %arg1: i32, %arg2: memref<1x8x18x4xbf16, #tpu.memory_space<vmem>>, %arg3: memref<1x2x18x4xbf16, #tpu.memory_space<vmem>>, %arg4: memref<36x128xbf16, #tpu.memory_space<vmem>>, %arg5: memref<1x128xf32, #tpu.memory_space<vmem>>, %arg6: memref<1x128xf32, #tpu.memory_space<vmem>>, %arg7: memref<1x128xf32, #tpu.memory_space<vmem>>, %arg8: memref<128x8xbf16, #tpu.memory_space<vmem>>, %arg9: memref<1x8xf32, #tpu.memory_space<vmem>>, %arg10: memref<1x8x16x8xbf16, #tpu.memory_space<vmem>>) attributes {dimension_semantics = [#tpu.dimension_semantics<parallel>, #tpu.dimension_semantics<parallel>], iteration_bounds = array<i64: 2, 2>, scalar_prefetch = 0 : i64, scratch_operands = 0 : i64, tpu.core_type = #tpu.core_type<tc>, window_params = [{transform_indices = @transform_0, window_bounds = array<i64: 1, 8, 18, 4>}, {transform_indices = @transform_1, window_bounds = array<i64: 1, 2, 18, 4>}, {pipeline_mode = #tpu.pipeline_mode<synchronous>, transform_indices = @transform_2, window_bounds = array<i64: 36, 128>}, {pipeline_mode = #tpu.pipeline_mode<synchronous>, transform_indices = @transform_3, window_bounds = array<i64: 1, 128>}, {pipeline_mode = #tpu.pipeline_mode<synchronous>, transform_indices = @transform_4, window_bounds = array<i64: 1, 128>}, {pipeline_mode = #tpu.pipeline_mode<synchronous>, transform_indices = @transform_5, window_bounds = array<i64: 1, 128>}, {pipeline_mode = #tpu.pipeline_mode<synchronous>, transform_indices = @transform_6, window_bounds = array<i64: 128, 8>}, {pipeline_mode = #tpu.pipeline_mode<synchronous>, transform_indices = @transform_7, window_bounds = array<i64: 1, 8>}, {transform_indices = @transform_8, window_bounds = array<i64: 1, 8, 16, 8>}]} {
    %c0 = arith.constant 0 : index
    %c0_0 = arith.constant 0 : index
    %c0_1 = arith.constant 0 : index
    %c0_2 = arith.constant 0 : index
    %0 = vector.load %arg2[%c0, %c0_0, %c0_1, %c0_2] : memref<1x8x18x4xbf16, #tpu.memory_space<vmem>>, vector<1x8x18x4xbf16>
    %1 = vector.shape_cast %0 : vector<1x8x18x4xbf16> to vector<8x18x4xbf16>
    %c0_3 = arith.constant 0 : index
    %c0_4 = arith.constant 0 : index
    %c0_5 = arith.constant 0 : index
    %c0_6 = arith.constant 0 : index
    %2 = vector.load %arg3[%c0_3, %c0_4, %c0_5, %c0_6] : memref<1x2x18x4xbf16, #tpu.memory_space<vmem>>, vector<1x2x18x4xbf16>
    %3 = vector.shape_cast %2 : vector<1x2x18x4xbf16> to vector<2x18x4xbf16>
    %4 = tpu.concatenate %1, %3 in 0 : vector<8x18x4xbf16>, vector<2x18x4xbf16> -> vector<10x18x4xbf16>
    %5 = vector.extract_strided_slice %4 {offsets = [0, 0, 0], sizes = [8, 16, 4], strides = [1, 1, 1]} : vector<10x18x4xbf16> to vector<8x16x4xbf16>
    %6 = vector.extract_strided_slice %4 {offsets = [0, 1, 0], sizes = [8, 16, 4], strides = [1, 1, 1]} : vector<10x18x4xbf16> to vector<8x16x4xbf16>
    %7 = vector.extract_strided_slice %4 {offsets = [0, 2, 0], sizes = [8, 16, 4], strides = [1, 1, 1]} : vector<10x18x4xbf16> to vector<8x16x4xbf16>
    %8 = vector.extract_strided_slice %4 {offsets = [1, 0, 0], sizes = [8, 16, 4], strides = [1, 1, 1]} : vector<10x18x4xbf16> to vector<8x16x4xbf16>
    %9 = vector.extract_strided_slice %4 {offsets = [1, 1, 0], sizes = [8, 16, 4], strides = [1, 1, 1]} : vector<10x18x4xbf16> to vector<8x16x4xbf16>
    %10 = vector.extract_strided_slice %4 {offsets = [1, 2, 0], sizes = [8, 16, 4], strides = [1, 1, 1]} : vector<10x18x4xbf16> to vector<8x16x4xbf16>
    %11 = vector.extract_strided_slice %4 {offsets = [2, 0, 0], sizes = [8, 16, 4], strides = [1, 1, 1]} : vector<10x18x4xbf16> to vector<8x16x4xbf16>
    %12 = vector.extract_strided_slice %4 {offsets = [2, 1, 0], sizes = [8, 16, 4], strides = [1, 1, 1]} : vector<10x18x4xbf16> to vector<8x16x4xbf16>
    %13 = vector.extract_strided_slice %4 {offsets = [2, 2, 0], sizes = [8, 16, 4], strides = [1, 1, 1]} : vector<10x18x4xbf16> to vector<8x16x4xbf16>
    %14 = tpu.concatenate %5, %6, %7, %8, %9, %10, %11, %12, %13 in 2 : vector<8x16x4xbf16>, vector<8x16x4xbf16>, vector<8x16x4xbf16>, vector<8x16x4xbf16>, vector<8x16x4xbf16>, vector<8x16x4xbf16>, vector<8x16x4xbf16>, vector<8x16x4xbf16>, vector<8x16x4xbf16> -> vector<8x16x36xbf16>
    %15 = vector.shape_cast %14 : vector<8x16x36xbf16> to vector<128x36xbf16>
    %c0_7 = arith.constant 0 : index
    %c0_8 = arith.constant 0 : index
    %16 = vector.load %arg4[%c0_7, %c0_8] : memref<36x128xbf16, #tpu.memory_space<vmem>>, vector<36x128xbf16>
    %cst = arith.constant dense<0.000000e+00> : vector<128x128xf32>
    %17 = tpu.matmul %15, %16, %cst {dimension_numbers = #tpu.dot_dimension_numbers<[1], [0], [0], [1], [0, 0, 1, 1], [], []>} : vector<128x36xbf16>, vector<36x128xbf16>, vector<128x128xf32> -> vector<128x128xf32>
    %c0_9 = arith.constant 0 : index
    %c0_10 = arith.constant 0 : index
    %18 = vector.load %arg5[%c0_9, %c0_10] : memref<1x128xf32, #tpu.memory_space<vmem>>, vector<1x128xf32>
    %19 = vector.broadcast %18 : vector<1x128xf32> to vector<128x128xf32>
    %20 = arith.addf %17, %19 : vector<128x128xf32>
    %cst_11 = arith.constant dense<0.000000e+00> : vector<128xf32>
    %21 = vector.multi_reduction <add>, %20, %cst_11 [1] : vector<128x128xf32> to vector<128xf32>
    %22 = vector.shape_cast %21 : vector<128xf32> to vector<128x1xf32>
    %23 = arith.mulf %20, %20 : vector<128x128xf32>
    %cst_12 = arith.constant dense<0.000000e+00> : vector<128xf32>
    %24 = vector.multi_reduction <add>, %23, %cst_12 [1] : vector<128x128xf32> to vector<128xf32>
    %25 = vector.shape_cast %24 : vector<128xf32> to vector<128x1xf32>
    %cst_13 = arith.constant 0.166666672 : f32
    %26 = vector.broadcast %cst_13 : f32 to vector<128x1xf32>
    %27 = arith.mulf %22, %26 : vector<128x1xf32>
    %cst_14 = arith.constant 0.166666672 : f32
    %28 = vector.broadcast %cst_14 : f32 to vector<128x1xf32>
    %29 = arith.mulf %25, %28 : vector<128x1xf32>
    %30 = arith.mulf %27, %27 : vector<128x1xf32>
    %31 = arith.subf %29, %30 : vector<128x1xf32>
    %32 = vector.broadcast %27 : vector<128x1xf32> to vector<128x128xf32>
    %33 = arith.subf %20, %32 : vector<128x128xf32>
    %cst_15 = arith.constant 9.99999974E-6 : f32
    %34 = vector.broadcast %cst_15 : f32 to vector<128x1xf32>
    %35 = arith.addf %31, %34 : vector<128x1xf32>
    %36 = math.rsqrt %35 : vector<128x1xf32>
    %37 = vector.broadcast %36 : vector<128x1xf32> to vector<128x128xf32>
    %38 = arith.mulf %33, %37 : vector<128x128xf32>
    %c0_16 = arith.constant 0 : index
    %c0_17 = arith.constant 0 : index
    %39 = vector.load %arg6[%c0_16, %c0_17] : memref<1x128xf32, #tpu.memory_space<vmem>>, vector<1x128xf32>
    %40 = vector.broadcast %39 : vector<1x128xf32> to vector<128x128xf32>
    %41 = arith.mulf %38, %40 : vector<128x128xf32>
    %c0_18 = arith.constant 0 : index
    %c0_19 = arith.constant 0 : index
    %42 = vector.load %arg7[%c0_18, %c0_19] : memref<1x128xf32, #tpu.memory_space<vmem>>, vector<1x128xf32>
    %43 = vector.broadcast %42 : vector<1x128xf32> to vector<128x128xf32>
    %44 = arith.addf %41, %43 : vector<128x128xf32>
    %cst_20 = arith.constant 5.000000e-01 : f32
    %45 = vector.broadcast %cst_20 : f32 to vector<128x128xf32>
    %46 = arith.mulf %45, %44 : vector<128x128xf32>
    %cst_21 = arith.constant 0.707106769 : f32
    %47 = vector.broadcast %cst_21 : f32 to vector<128x128xf32>
    %48 = arith.mulf %44, %47 : vector<128x128xf32>
    %49 = math.erf %48 : vector<128x128xf32>
    %cst_22 = arith.constant 1.000000e+00 : f32
    %50 = vector.broadcast %cst_22 : f32 to vector<128x128xf32>
    %51 = arith.addf %50, %49 : vector<128x128xf32>
    %52 = arith.mulf %46, %51 : vector<128x128xf32>
    %53 = arith.truncf %52 : vector<128x128xf32> to vector<128x128xbf16>
    %c0_23 = arith.constant 0 : index
    %c0_24 = arith.constant 0 : index
    %54 = vector.load %arg8[%c0_23, %c0_24] : memref<128x8xbf16, #tpu.memory_space<vmem>>, vector<128x8xbf16>
    %cst_25 = arith.constant dense<0.000000e+00> : vector<128x8xf32>
    %55 = tpu.matmul %53, %54, %cst_25 {dimension_numbers = #tpu.dot_dimension_numbers<[1], [0], [0], [1], [0, 0, 1, 1], [], []>} : vector<128x128xbf16>, vector<128x8xbf16>, vector<128x8xf32> -> vector<128x8xf32>
    %c0_26 = arith.constant 0 : index
    %c0_27 = arith.constant 0 : index
    %56 = vector.load %arg9[%c0_26, %c0_27] : memref<1x8xf32, #tpu.memory_space<vmem>>, vector<1x8xf32>
    %57 = vector.broadcast %56 : vector<1x8xf32> to vector<128x8xf32>
    %58 = arith.addf %55, %57 : vector<128x8xf32>
    %59 = vector.shape_cast %58 : vector<128x8xf32> to vector<8x16x8xf32>
    %60 = arith.truncf %59 : vector<8x16x8xf32> to vector<8x16x8xbf16>
    %c0_28 = arith.constant 0 : index
    %c0_29 = arith.constant 0 : index
    %c0_30 = arith.constant 0 : index
    %c0_31 = arith.constant 0 : index
    %61 = vector.load %arg10[%c0_28, %c0_29, %c0_30, %c0_31] : memref<1x8x16x8xbf16, #tpu.memory_space<vmem>>, vector<1x8x16x8xbf16>
    %62 = vector.shape_cast %61 : vector<1x8x16x8xbf16> to vector<8x16x8xbf16>
    %63 = vector.shape_cast %60 : vector<8x16x8xbf16> to vector<1x8x16x8xbf16>
    tpu.vector_store %arg10[%c0_28, %c0_29, %c0_30, %c0_31], %63 {strides = array<i32>} : memref<1x8x16x8xbf16, #tpu.memory_space<vmem>>, vector<1x8x16x8xbf16>,
    return
  }
  func.func @transform_0(%arg0: i32, %arg1: i32) -> (i32, i32, i32, i32) {
    %c0_i32 = arith.constant 0 : i32
    %c0_i32_0 = arith.constant 0 : i32
    %c0_i32_1 = arith.constant 0 : i32
    return %arg0, %arg1, %c0_i32, %c0_i32_0 : i32, i32, i32, i32
  }
  func.func @transform_1(%arg0: i32, %arg1: i32) -> (i32, i32, i32, i32) {
    %c0_i32 = arith.constant 0 : i32
    %c0_i32_0 = arith.constant 0 : i32
    %c0_i32_1 = arith.constant 0 : i32
    return %arg0, %arg1, %c0_i32, %c0_i32_0 : i32, i32, i32, i32
  }
  func.func @transform_2(%arg0: i32, %arg1: i32) -> (i32, i32) {
    %c0_i32 = arith.constant 0 : i32
    %c0_i32_0 = arith.constant 0 : i32
    %c0_i32_1 = arith.constant 0 : i32
    return %c0_i32, %c0_i32_0 : i32, i32
  }
  func.func @transform_3(%arg0: i32, %arg1: i32) -> (i32, i32) {
    %c0_i32 = arith.constant 0 : i32
    %c0_i32_0 = arith.constant 0 : i32
    %c0_i32_1 = arith.constant 0 : i32
    return %c0_i32, %c0_i32_0 : i32, i32
  }
  func.func @transform_4(%arg0: i32, %arg1: i32) -> (i32, i32) {
    %c0_i32 = arith.constant 0 : i32
    %c0_i32_0 = arith.constant 0 : i32
    %c0_i32_1 = arith.constant 0 : i32
    return %c0_i32, %c0_i32_0 : i32, i32
  }
  func.func @transform_5(%arg0: i32, %arg1: i32) -> (i32, i32) {
    %c0_i32 = arith.constant 0 : i32
    %c0_i32_0 = arith.constant 0 : i32
    %c0_i32_1 = arith.constant 0 : i32
    return %c0_i32, %c0_i32_0 : i32, i32
  }
  func.func @transform_6(%arg0: i32, %arg1: i32) -> (i32, i32) {
    %c0_i32 = arith.constant 0 : i32
    %c0_i32_0 = arith.constant 0 : i32
    %c0_i32_1 = arith.constant 0 : i32
    return %c0_i32, %c0_i32_0 : i32, i32
  }
  func.func @transform_7(%arg0: i32, %arg1: i32) -> (i32, i32) {
    %c0_i32 = arith.constant 0 : i32
    %c0_i32_0 = arith.constant 0 : i32
    %c0_i32_1 = arith.constant 0 : i32
    return %c0_i32, %c0_i32_0 : i32, i32
  }
  func.func @transform_8(%arg0: i32, %arg1: i32) -> (i32, i32, i32, i32) {
    %c0_i32 = arith.constant 0 : i32
    %c0_i32_0 = arith.constant 0 : i32
    %c0_i32_1 = arith.constant 0 : i32
    return %arg0, %arg1, %c0_i32, %c0_i32_0 : i32, i32, i32, i32
  }
}

</mosaic_0001>

<bundles_post_ra>
// kernel: tpu_custom_call.1
= control target key start
LH: loop header
LB: loop body
LE: loop exit
PB: predicated region body
PF: predicated region fallthrough
CT: control target
= control target key end

     0   :  { %s2225_s27 = smov 0   ;;  %s2227_s28 = smov 0   ;;  %s2822_s0 = inlined_call_operand.vmem [shape: bf16[2,18,18,4], index: 0, kind: input, shape index: {}]   ;;  %s2823_s1 = inlined_call_operand.vmem [shape: bf16[2,4,18,4], index: 1, kind: input, shape index: {}]   ;;  %s2824_s2 = inlined_call_operand.vmem [shape: bf16[36,128], index: 2, kind: input, shape index: {}]   ;;  %s2825_s3 = inlined_call_operand.vmem [shape: f32[1,128], index: 3, kind: input, shape index: {}]   ;;  %s2826_s4 = inlined_call_operand.vmem [shape: f32[1,128], index: 4, kind: input, shape index: {}]   ;;  %s2827_s5 = inlined_call_operand.vmem [shape: f32[1,128], index: 5, kind: input, shape index: {}]   ;;  %s2828_s6 = inlined_call_operand.vmem [shape: bf16[128,8], index: 6, kind: input, shape index: {}]   ;;  %s2829_s7 = inlined_call_operand.vmem [shape: f32[1,8], index: 7, kind: input, shape index: {}]   ;;  %s2830_s8 = inlined_call_operand.vmem [shape: bf16[2,16,16,8], index: 8, kind: output, shape index: {}]  }
   0x1   :  { %s2229_s29 = smov 0   ;;  %s2231_s30 = smov 0  }
   0x2   :  { %s2233_s9 = smov 0  }
   0x3 LB: > { %s27_s10 = sadd.s32 1, %s2162_s29  ;;  %s30_s11 = sadd.s32 1, %s2166_s30  ;;  %s2170_s9 = sphi %s2233_s9, %s18_s9   ;;  %s2166_s30 = sphi %s2231_s30, %s2834_s30   ;;  %s2162_s29 = sphi %s2229_s29, %s2833_s29   ;;  %s2158_s28 = sphi %s2227_s28, %s2832_s28   ;;  %s2154_s27 = sphi %s2225_s27, %s2831_s27  }
   0x4   : > { %p28_p0 = scmp.ge.s32.totalorder %s27_s10, 2  ;;  %p1801_p1 = scmp.ge.s32.totalorder %s2170_s9, 1 }
   0x5   : > { %p312_p2 = scmp.lt.s32.totalorder %s2170_s9, 5 }
   0x6   : > { %s2836_s10 = smov (%p28_p0, %s27_s10), 0  ;;  %s2838_s11 = smov (!%p28_p0, %s30_s11), %s2166_s30 }
   0x7   : > { %p313_p3 = pnand %p1801_p1, %p312_p2  ;;  %p32_p4 = scmp.ge.s32.totalorder %s2838_s11, 2 }
   0x8   : > { %s2258_s12 = sshll.u32 (!%p313_p3), %s2154_s27, 3  ;;  %p377_p5 = scmp.lt.s32.totalorder (!%p313_p3), %s2158_s28, 1  ;;  %vm622_vm0 = vcmask (!%p313_p3), 1046528   ;;  %vm509_vm1 = vsmask.f32 (!%p313_p3), 7424  ;;  %v2057_v53 = vld [vmem:[%s2824_s2] sm:$0xff] (!%p313_p3)  }
   0x9   : > { %s2840_s11 = smov (%p32_p4, %s2838_s11), 0  ;;  %316 = sbr.rel (%p313_p3) target bundleno = 898 (0x382), region = 52 }
   0xa   : > { %p379_p6 = scmp.lt.s32.totalorder (!%p313_p3), %s2258_s12, 17  ;;  %s2172_s21 = smov (!%p313_p3), 12   ;;  %v2058_v54 = vld [vmem:[%s2824_s2 + $0x8] sm:$0xff] (!%p313_p3)   ;;  %1914 = vmatprep.subr.bf16.mxu0 (!%p313_p3), %v2057_v53  ;;  %vm985_vm2 = vcmask (!%p313_p3), 1041408   ;;  %vm805_vm3 = vcmask (!%p313_p3), 31744   ;;  %vm822_vm4 = vcmask (!%p313_p3), 64512  }
   0xb   : > { %s2173_s22 = smov (!%p313_p3), 24   ;;  %s1804_s23 = sshll.u32 (!%p313_p3), %s2154_s27, 1  ;;  %1915 = vmatpush3.bf16.msra.mxu0 (!%p313_p3), %v2057_v53  ;;  %vm839_vm5 = vcmask (!%p313_p3), 97280   ;;  %vm856_vm6 = vcmask (!%p313_p3), 130048   ;;  %vm873_vm7 = vcmask (!%p313_p3), 162816   ;;  %vm890_vm8 = vcmask (!%p313_p3), 195584  }
   0xc   : > { %s2174_s24 = smov (!%p313_p3), 8   ;;  %s2175_s25 = smov (!%p313_p3), 20   ;;  %1916 = vmatprep.subr.bf16.mxu0 (!%p313_p3), %v2058_v54  ;;  %vm907_vm9 = vcmask (!%p313_p3), 228352   ;;  %vm924_vm10 = vcmask (!%p313_p3), 261120   ;;  %vm968_vm11 = vcmask (!%p313_p3), 293888   ;;  %vm1660_vm12 = vcmask (!%p313_p3), 60416  }
   0xd   : > { %p395_p7 = scmp.lt.s32.totalorder (!%p313_p3), %s1804_s23, 3  ;;  %s2176_s26 = smov (!%p313_p3), 4  }
   0xe   : > { %s2178_s18 = smov (!%p313_p3), 28   ;;  %p406_p8 = scmp.lt.s32.totalorder (!%p313_p3), %s2258_s12, 15 }
   0xf   : > { %1917 = vmatpush3.bf16.msra.mxu0 (!%p313_p3), %v2058_v54 }
  0x10   : > { %s2842_s28 = smov (!%p377_p5, %s2158_s28), 1  ;;  %s2844_s23 = smov (!%p395_p7, %s1804_s23), 3 }
  0x11   : > { %s380_s13 = scalar_select %p379_p6, %s2258_s12, 17 }
  0x12   : > { %s1986_s14 = smul.u32 54, %s2842_s28  ;;  %s2846_s12 = smov (!%p406_p8, %s2258_s12), 15 }
  0x13   : > { %s1985_s15 = smul.u32 3, %s380_s13 }
  0x14   : > { %s1988_s13 = smul.u32 12, %s2842_s28 }
  0x15   : > { %s383_s16 = sadd.s32 %s1986_s14, %s1985_s15  ;;  %s1987_s27 = smul.u32 3, %s2844_s23 }
  0x16   : > { %s1803_s17 = sshll.u32 %s383_s16, 2  ;;  %s2177_s14 = smov 16  }
  0x17   : > { %s2268_s20 = scalar_lea.vmem %s2822_s0, %s1803_s17  ;;  %s399_s19 = sadd.s32 %s1988_s13, %s1987_s27 }
  0x18   : > { %v2271_v0 = vld [vmem:[%s2268_s20 + $0x18] sm:$0xff]   ;;  %v2274_v1 = vld [vmem:[%s2268_s20 + $0xc] sm:$0xff]   ;;  %v2279_v2 = vld [vmem:[%s2268_s20 + $0x24] sm:$0xff]   ;;  %s1805_s23 = sshll.u32 %s399_s19, 2  ;;  %s2179_s19 = smov 32  }
  0x19   : > { %670 = vrot.lane.b32.xlu1 %v2271_v0, %s2172_s21  ;;  %668 = vrot.lane.b32.xlu0 %v2274_v1, %s2172_s21  ;;  %v2040_v3 = vld [vmem:[%s2268_s20 + $0x14] ss:$0 sps:$4 sm:$0x11]   ;;  %v626_v4 = vrot.slane %v2274_v1, 1  ;;  %v2286_v6 = vld [vmem:[%s2268_s20] sm:$0xff]   ;;  %v629_v8 = vrot.slane %v2271_v0, 1  ;;  %s401_s17 = scalar_lea.vmem %s2823_s1, %s1805_s23 }
  0x1a   : > { %v627_v5 = vrot.slane %v2040_v3, 1  ;;  %v2042_v7 = vld [vmem:[%s2268_s20 + $0x8] ss:$0 sps:$4 sm:$0x11]   ;;  %v525_v10 = vshll.u32 %v2274_v1, 16  ;;  %v623_v12 = vrot.slane %v2286_v6, 1 }
  0x1b   : > { %v2043_v9 = vld [vmem:[%s2268_s20 + $0x20] ss:$0 sps:$4 sm:$0x11]   ;;  %v624_v13 = vrot.slane %v2042_v7, 1  ;;  %v523_v14 = vshrl.u32 %v2274_v1, 16  ;;  %v511_v15 = vshrl.u32 %v2286_v6, 16 }
  0x1c   : > { %v628_v11 = vsel %vm622_vm0, %v626_v4, %v627_v5  ;;  %v513_v16 = vshll.u32 %v2286_v6, 16  ;;  %v518_v17 = vshll.u32 %v2042_v7, 16  ;;  %v527_v18 = vrot.slane %v525_v10, 1  ;;  %v2305_v23 = vld [vmem:[%s2268_s20 + $0x2c] ss:$0 sps:$4 sm:$0x11]  }
  0x1d   : > { %741 = vrot.lane.b32.xlu1 %v2279_v2, %s2173_s22  ;;  %739 = vrot.lane.b32.xlu0 %v2271_v0, %s2173_s22  ;;  %v625_v19 = vsel %vm622_vm0, %v623_v12, %v624_v13  ;;  %v630_v20 = vrot.slane %v2043_v9, 1  ;;  %v530_v21 = vshll.u32 %v2040_v3, 16  ;;  %v537_v22 = vshll.u32 %v2271_v0, 16  ;;  %v2323_v41 = vld [vmem:[%s2268_s20 + $0x48] sm:$0xff]   ;;  %v2330_v42 = vld [vmem:[%s2268_s20 + $0x54] sm:$0xff]   ;;  %s1807_s23 = sshll.u32 %s2846_s12, 1 }
  0x1e   : > { %v515_v24 = vrot.slane %v513_v16, 1  ;;  %v520_v25 = vrot.slane %v518_v17, 1  ;;  %v535_v26 = vshrl.u32 %v2271_v0, 16  ;;  %v542_v28 = vshll.u32 %v2043_v9, 16  ;;  %v2360_v61 = vld [vmem:[%s2268_s20 + $0x30] sm:$0xff]   ;;  %v2371_v5 = vld [vmem:[%s401_s17] sm:$0xff]  }
  0x1f   : > { %v539_v27 = vrot.slane %v537_v22, 1  ;;  %v528_v30 = vor.u32 %v527_v18, %v523_v14  ;;  %v532_v31 = vrot.slane %v530_v21, 1  ;;  %v549_v32 = vshll.u32 %v2279_v2, 16  ;;  %v2335_v46 = vld [vmem:[%s2268_s20 + $0x50] ss:$0 sps:$4 sm:$0x11]  }
  0x20   : > { %v516_v29 = vor.u32 %v515_v24, %v511_v15  ;;  %v2316_v34 = vsel %vm622_vm0, %v629_v8, %v630_v20  ;;  %v547_v35 = vshrl.u32 %v2279_v2, 16  ;;  %v544_v37 = vrot.slane %v542_v28, 1  ;;  %v2052_v49 = vld [vmem:[%s2268_s20 + $0x5c] ss:$0 sps:$4 sm:$0x11]   ;;  %v2374_v8 = vld [vmem:[%s401_s17 + $0xc] sm:$0xff]  }
  0x21   : > { %647 = vrot.lane.b32.xlu1 %v625_v19, %s2174_s24  ;;  %718 = vrot.lane.b32.xlu0 %v628_v11, %s2175_s25  ;;  %v540_v36 = vor.u32 %v539_v27, %v535_v26  ;;  %v551_v38 = vrot.slane %v549_v32, 1  ;;  %v554_v39 = vshll.u32 %v2305_v23, 16  ;;  %v533_v40 = vsel %vm509_vm1, %v528_v30, %v532_v31  ;;  %v2054_v7 = vld [vmem:[%s401_s17 + $0x8] ss:$0 sps:$4 sm:$0x11]   ;;  %s1808_s15 = sshll.u32 %s2842_s28, 5 }
  0x22   : > { %v521_v33 = vsel %vm509_vm1, %v516_v29, %v520_v25  ;;  %v641_v47 = vrot.slane %v2323_v41, 1  ;;  %v642_v48 = vrot.slane %v2335_v46, 1  ;;  %v595_v50 = vshrl.u32 %v2330_v42, 16  ;;  %v2059_v13 = vld [vmem:[%s2824_s2 + $0x10] ss:$0 sps:$4 sm:$0x33]   ;;  %s410_s16 = sadd.s32 %s1808_s15, %s1807_s23 }
  0x23   : > { %v545_v43 = vsel %vm509_vm1, %v540_v36, %v544_v37  ;;  %v552_v44 = vor.u32 %v551_v38, %v547_v35  ;;  %v556_v45 = vrot.slane %v554_v39, 1  ;;  %v597_v51 = vshll.u32 %v2330_v42, 16  ;;  %v2046_v14 = vld [vmem:[%s2268_s20 + $0x38] ss:$0 sps:$4 sm:$0x11]   ;;  %1984 = vmatprep.subr.msk.bf16.mxu0 %vm985_vm2, %v2059_v13  ;;  %s1809_s13 = sshll.u32 %s410_s16, 2 }
  0x24   : > { %v644_v52 = vrot.slane %v2330_v42, 1  ;;  %v2356_v56 = vsel %vm622_vm0, %v641_v47, %v642_v48  ;;  %v602_v57 = vshll.u32 %v2052_v49, 16  ;;  %v645_v59 = vrot.slane %v2052_v49, 1  ;;  %v2056_v19 = vld [vmem:[%s401_s17 + $0x14] ss:$0 sps:$4 sm:$0x11]  }
  0x25   : > { %649 = vrot.lane.b32.xlu1 %v628_v11, %s2174_s24  ;;  %606 = vrot.lane.b32.xlu0 %v521_v33, %s2176_s26  ;;  %v2353_v55 = vsel %vm509_vm1, %v552_v44, %v556_v45  ;;  %v599_v58 = vrot.slane %v597_v51, 1  ;;  %v632_v60 = vrot.slane %v2279_v2, 1  ;;  %v633_v63 = vrot.slane %v2305_v23, 1  ;;  %v2414_v44 = vld [vmem:[%s2268_s20 + $0x3c] sm:$0xff]  }
  0x26   : > { %v604_v62 = vrot.slane %v602_v57, 1  ;;  %v2369_v4 = vsel %vm622_vm0, %v644_v52, %v645_v59  ;;  %v688_v10 = vshrl.u32 %v2371_v5, 16  ;;  %v690_v11 = vshll.u32 %v2371_v5, 16  ;;  %v2048_v49 = vld [vmem:[%s2268_s20 + $0x44] ss:$0 sps:$4 sm:$0x11]   ;;  %s2773_s20 = scalar_lea.vmem %s2830_s8, %s1809_s13 }
  0x27   : > { %v600_v3 = vor.u32 %v599_v58, %v595_v50  ;;  %v715_v12 = vrot.slane %v2371_v5, 1  ;;  %v695_v15 = vshll.u32 %v2054_v7, 16  ;;  %v716_v16 = vrot.slane %v2054_v7, 1 }
  0x28   : > { %v634_v17 = vsel %vm622_vm0, %v632_v60, %v633_v63  ;;  %v692_v18 = vrot.slane %v690_v11, 1  ;;  %v759_v20 = vshrl.u32 %v2374_v8, 16  ;;  %v761_v21 = vshll.u32 %v2374_v8, 16 }
  0x29   : > { %720 = vrot.lane.b32.xlu1 %v2316_v34, %s2175_s25  ;;  %608 = vrot.lane.b32.xlu0 %v533_v40, %s2176_s26  ;;  %v2377_v9 = vsel %vm509_vm1, %v600_v3, %v604_v62  ;;  %v561_v22 = vshll.u32 %v2360_v61, 16  ;;  %v697_v23 = vrot.slane %v695_v15, 1  ;;  %v2394_v24 = vsel %vm622_vm0, %v715_v12, %v716_v16 }
  0x2a   : > { %v786_v25 = vrot.slane %v2374_v8, 1  ;;  %v693_v26 = vor.u32 %v692_v18, %v688_v10  ;;  %v763_v27 = vrot.slane %v761_v21, 1  ;;  %v766_v28 = vshll.u32 %v2056_v19, 16 }
  0x2b   : > { %v787_v29 = vrot.slane %v2056_v19, 1  ;;  %v559_v35 = vshrl.u32 %v2360_v61, 16  ;;  %v563_v36 = vrot.slane %v561_v22, 1  ;;  %v566_v37 = vshll.u32 %v2046_v14, 16 }
  0x2c   : > { %v2400_v30 = vsel %vm509_vm1, %v693_v26, %v697_v23  ;;  %v764_v31 = vor.u32 %v763_v27, %v759_v20  ;;  %v768_v32 = vrot.slane %v766_v28, 1  ;;  %v987_v38 = vsel %vm985_vm2, %v2059_v13, 0 }
  0x2d   : > { %701 = vrot.lane.b32.xlu1 %v545_v43, %s2177_s14  ;;  %699 = vrot.lane.b32.xlu0 %v533_v40, %s2177_s14  ;;  %v2403_v33 = vsel %vm622_vm0, %v786_v25, %v787_v29  ;;  %v564_v40 = vor.u32 %v563_v36, %v559_v35  ;;  %v635_v47 = vrot.slane %v2360_v61, 1  ;;  %v636_v48 = vrot.slane %v2046_v14, 1 }
  0x2e   : > { %v2408_v39 = vsel %vm509_vm1, %v764_v31, %v768_v32  ;;  %1919 = vmatpush3.bf16.msra.mxu0 %v987_v38  ;;  %v573_v50 = vshll.u32 %v2414_v44, 16  ;;  %v571_v51 = vshrl.u32 %v2414_v44, 16  ;;  %v578_v53 = vshll.u32 %v2048_v49, 16 }
  0x2f   : > { %v638_v58 = vrot.slane %v2414_v44, 1  ;;  %v639_v59 = vrot.slane %v2048_v49, 1  ;;  %v585_v60 = vshll.u32 %v2323_v41, 16  ;;  %v583_v63 = vshrl.u32 %v2323_v41, 16 }
  0x30   : > { %v575_v52 = vrot.slane %v573_v50, 1  ;;  %v580_v57 = vrot.slane %v578_v53, 1  ;;  %v590_v7 = vshll.u32 %v2335_v46, 16 }
  0x31   : > { %772 = vrot.lane.b32.xlu1 %v2353_v55, %s2178_s18  ;;  %770 = vrot.lane.b32.xlu0 %v545_v43, %s2178_s18  ;;  %v640_v62 = vsel %vm622_vm0, %v638_v58, %v639_v59  ;;  %v587_v3 = vrot.slane %v585_v60, 1 }
  0x32   : > { %v576_v54 = vor.u32 %v575_v52, %v571_v51  ;;  %v592_v11 = vrot.slane %v590_v7, 1 }
  0x33   : > { %v588_v10 = vor.u32 %v587_v3, %v583_v63 }
  0x35   : > { %610 = vrot.lane.b32.xlu1 %v545_v43, %s2176_s26  ;;  %789 = vrot.lane.b32.xlu0 %v2316_v34, %s2179_s19  ;;  %v568_v43 = vrot.slane %v566_v37, 1  ;;  %v593_v12 = vsel %vm509_vm1, %v588_v10, %v592_v11 }
  0x37   : > { %v569_v45 = vsel %vm509_vm1, %v564_v40, %v568_v43 }
  0x39   : > { %612 = vrot.lane.b32.xlu1 %v2353_v55, %s2176_s26  ;;  %791 = vrot.lane.b32.xlu0 %v634_v17, %s2179_s19 }
  0x3d   : > { %653 = vrot.lane.b32.xlu1 %v634_v17, %s2174_s24  ;;  %651 = vrot.lane.b32.xlu0 %v2316_v34, %s2174_s24  ;;  %v637_v34 = vsel %vm622_vm0, %v635_v47, %v636_v48 }
  0x41   : > { %674 = vrot.lane.b32.xlu1 %v2360_v61, %s2172_s21  ;;  %672 = vrot.lane.b32.xlu0 %v2279_v2, %s2172_s21 }
  0x45   : > { %705 = vrot.lane.b32.xlu1 %v569_v45, %s2177_s14  ;;  %703 = vrot.lane.b32.xlu0 %v2353_v55, %s2177_s14  ;;  %v581_v55 = vsel %vm509_vm1, %v576_v54, %v580_v57 }
  0x49   : > { %724 = vrot.lane.b32.xlu1 %v637_v34, %s2175_s25  ;;  %722 = vrot.lane.b32.xlu0 %v634_v17, %s2175_s25 }
  0x4d   : > { %745 = vrot.lane.b32.xlu1 %v2414_v44, %s2173_s22  ;;  %743 = vrot.lane.b32.xlu0 %v2360_v61, %s2173_s22 }
  0x51   : > { %776 = vrot.lane.b32.xlu1 %v581_v55, %s2178_s18  ;;  %774 = vrot.lane.b32.xlu0 %v569_v45, %s2178_s18 }
  0x55   : > { %614 = vrot.lane.b32.xlu1 %v569_v45, %s2176_s26  ;;  %793 = vrot.lane.b32.xlu0 %v637_v34, %s2179_s19 }
  0x59   : > { %616 = vrot.lane.b32.xlu1 %v581_v55, %s2176_s26  ;;  %795 = vrot.lane.b32.xlu0 %v640_v62, %s2179_s19 }
  0x5d   : > { %657 = vrot.lane.b32.xlu1 %v640_v62, %s2174_s24  ;;  %655 = vrot.lane.b32.xlu0 %v637_v34, %s2174_s24 }
  0x61   : > { %678 = vrot.lane.b32.xlu1 %v2323_v41, %s2172_s21  ;;  %676 = vrot.lane.b32.xlu0 %v2414_v44, %s2172_s21 }
  0x65   : > { %709 = vrot.lane.b32.xlu1 %v593_v12, %s2177_s14  ;;  %707 = vrot.lane.b32.xlu0 %v581_v55, %s2177_s14 }
  0x69   : > { %728 = vrot.lane.b32.xlu1 %v2356_v56, %s2175_s25  ;;  %726 = vrot.lane.b32.xlu0 %v640_v62, %s2175_s25 }
  0x6d   : > { %749 = vrot.lane.b32.xlu1 %v2330_v42, %s2173_s22  ;;  %747 = vrot.lane.b32.xlu0 %v2323_v41, %s2173_s22 }
  0x71   : > { %780 = vrot.lane.b32.xlu1 %v2377_v9, %s2178_s18  ;;  %778 = vrot.lane.b32.xlu0 %v593_v12, %s2178_s18 }
  0x75   : > { %618 = vrot.lane.b32.xlu1 %v593_v12, %s2176_s26  ;;  %797 = vrot.lane.b32.xlu0 %v2356_v56, %s2179_s19 }
  0x79   : > { %620 = vrot.lane.b32.xlu1 %v2377_v9, %s2176_s26  ;;  %799 = vrot.lane.b32.xlu0 %v2369_v4, %s2179_s19 }
  0x7d   : > { %661 = vrot.lane.b32.xlu1 %v2369_v4, %s2174_s24  ;;  %659 = vrot.lane.b32.xlu0 %v2356_v56, %s2174_s24 }
  0x81   : > { %682 = vrot.lane.b32.xlu1 %v2371_v5, %s2172_s21  ;;  %680 = vrot.lane.b32.xlu0 %v2330_v42, %s2172_s21 }
  0x85   : > { %713 = vrot.lane.b32.xlu1 %v2400_v30, %s2177_s14  ;;  %711 = vrot.lane.b32.xlu0 %v2377_v9, %s2177_s14 }
  0x89   : > { %732 = vrot.lane.b32.xlu1 %v2394_v24, %s2175_s25  ;;  %730 = vrot.lane.b32.xlu0 %v2369_v4, %s2175_s25 }
  0x8b   : > { %v671_v46 = vpop.permute.xlu1 %670  ;;  %v669_v56 = vpop.permute.xlu0 %668 }
  0x8d   : > { %753 = vrot.lane.b32.xlu1 %v2374_v8, %s2173_s22  ;;  %751 = vrot.lane.b32.xlu0 %v2371_v5, %s2173_s22 }
  0x8f   : > { %v742_v13 = vpop.permute.xlu1 %741  ;;  %v740_v14 = vpop.permute.xlu0 %739 }
  0x91   : > { %784 = vrot.lane.b32.xlu1 %v2408_v39, %s2178_s18  ;;  %782 = vrot.lane.b32.xlu0 %v2400_v30, %s2178_s18 }
  0x93   : > { %v648_v9 = vpop.permute.xlu1 %647  ;;  %v719_v15 = vpop.permute.xlu0 %718 }
  0x95   : > { %803 = vrot.lane.b32.xlu1 %v2403_v33, %s2179_s19  ;;  %801 = vrot.lane.b32.xlu0 %v2394_v24, %s2179_s19 }
  0x97   : > { %v650_v4 = vpop.permute.xlu1 %649  ;;  %v607_v8 = vpop.permute.xlu0 %606 }
  0x98   : > { %v807_v5 = vsel %vm805_vm3, %v2286_v6, %v607_v8 }
  0x99   : > { %v824_v18 = vsel %vm822_vm4, %v807_v5, %v648_v9 }
  0x9a   : > { %v841_v23 = vsel %vm839_vm5, %v824_v18, %v669_v56 }
  0x9b   : > { %v721_v16 = vpop.permute.xlu1 %720  ;;  %v609_v17 = vpop.permute.xlu0 %608 }
  0x9c   : > { %v809_v19 = vsel %vm805_vm3, %v2274_v1, %v609_v17 }
  0x9d   : > { %v826_v20 = vsel %vm822_vm4, %v809_v19, %v650_v4 }
  0x9e   : > { %v843_v22 = vsel %vm839_vm5, %v826_v20, %v671_v46 }
  0x9f   : > { %v702_v21 = vpop.permute.xlu1 %701  ;;  %v700_v24 = vpop.permute.xlu0 %699 }
  0xa0   : > { %v858_v6 = vsel %vm856_vm6, %v841_v23, %v700_v24  ;;  %v860_v26 = vsel %vm856_vm6, %v843_v22, %v702_v21 }
  0xa1   : > { %v875_v25 = vsel %vm873_vm7, %v858_v6, %v719_v15  ;;  %v877_v29 = vsel %vm873_vm7, %v860_v26, %v721_v16 }
  0xa2   : > { %v892_v28 = vsel %vm890_vm8, %v875_v25, %v740_v14  ;;  %v894_v33 = vsel %vm890_vm8, %v877_v29, %v742_v13 }
  0xa3   : > { %v773_v27 = vpop.permute.xlu1 %772  ;;  %v771_v1 = vpop.permute.xlu0 %770 }
  0xa4   : > { %v909_v31 = vsel %vm907_vm9, %v892_v28, %v771_v1  ;;  %v911_v37 = vsel %vm907_vm9, %v894_v33, %v773_v27 }
  0xa7   : > { %v611_v30 = vpop.permute.xlu1 %610  ;;  %v790_v32 = vpop.permute.xlu0 %789 }
  0xa8   : > { %v926_v35 = vsel %vm924_vm10, %v909_v31, %v790_v32  ;;  %v811_v53 = vsel %vm805_vm3, %v2271_v0, %v611_v30 }
  0xa9   : > { %1920 = vmatprep.mubr.msk.bf16.mxu0 %vm968_vm11, %v926_v35 }
  0xab   : > { %v613_v36 = vpop.permute.xlu1 %612  ;;  %v792_v38 = vpop.permute.xlu0 %791 }
  0xac   : > { %v928_v39 = vsel %vm924_vm10, %v911_v37, %v792_v38  ;;  %v813_v60 = vsel %vm805_vm3, %v2279_v2, %v613_v36 }
  0xad   : > { %1921 = vmatmul.mubr.msk.bf16.vlgmr.msra.gmra.mrb[0].mxu0 %vm968_vm11, %v928_v39 }
  0xaf   : > { %v654_v40 = vpop.permute.xlu1 %653  ;;  %v652_v43 = vpop.permute.xlu0 %651 }
  0xb0   : > { %v828_v54 = vsel %vm822_vm4, %v811_v53, %v652_v43  ;;  %v830_v63 = vsel %vm822_vm4, %v813_v60, %v654_v40 }
  0xb3   : > { %v675_v45 = vpop.permute.xlu1 %674  ;;  %v673_v47 = vpop.permute.xlu0 %672 }
  0xb4   : > { %v845_v55 = vsel %vm839_vm5, %v828_v54, %v673_v47  ;;  %v847_v0 = vsel %vm839_vm5, %v830_v63, %v675_v45 }
  0xb7   : > { %v706_v48 = vpop.permute.xlu1 %705  ;;  %v704_v49 = vpop.permute.xlu0 %703 }
  0xb8   : > { %v862_v59 = vsel %vm856_vm6, %v845_v55, %v704_v49  ;;  %v864_v12 = vsel %vm856_vm6, %v847_v0, %v706_v48 }
  0xbb   : > { %v725_v50 = vpop.permute.xlu1 %724  ;;  %v723_v34 = vpop.permute.xlu0 %722 }
  0xbc   : > { %v879_v62 = vsel %vm873_vm7, %v862_v59, %v723_v34  ;;  %v881_v56 = vsel %vm873_vm7, %v864_v12, %v725_v50 }
  0xbf   : > { %v746_v51 = vpop.permute.xlu1 %745  ;;  %v744_v52 = vpop.permute.xlu0 %743 }
  0xc0   : > { %v896_v3 = vsel %vm890_vm8, %v879_v62, %v744_v52  ;;  %v898_v2 = vsel %vm890_vm8, %v881_v56, %v746_v51 }
  0xc3   : > { %v777_v57 = vpop.permute.xlu1 %776  ;;  %v775_v58 = vpop.permute.xlu0 %774 }
  0xc4   : > { %v913_v10 = vsel %vm907_vm9, %v896_v3, %v775_v58  ;;  %v915_v14 = vsel %vm907_vm9, %v898_v2, %v777_v57 }
  0xc7   : > { %v615_v7 = vpop.permute.xlu1 %614  ;;  %v794_v11 = vpop.permute.xlu0 %793 }
  0xc8   : > { %v930_v46 = vsel %vm924_vm10, %v913_v10, %v794_v11  ;;  %v815_v23 = vsel %vm805_vm3, %v2360_v61, %v615_v7 }
  0xc9   : > { %1924 = vmatprep.mubr.msk.bf16.mxu0 %vm968_vm11, %v930_v46 }
  0xcb   : > { %v617_v13 = vpop.permute.xlu1 %616  ;;  %v796_v9 = vpop.permute.xlu0 %795 }
  0xcc   : > { %v932_v15 = vsel %vm924_vm10, %v915_v14, %v796_v9  ;;  %v817_v1 = vsel %vm805_vm3, %v2414_v44, %v617_v13  ;;  %v2584_v9 = vld [vmem:[%s2825_s3] ss:$0 sm:$0xff] }
  0xcd   : > { %1925 = vmatmul.mubr.msk.bf16.gmra.mrb[4].mxu0 %vm968_vm11, %v932_v15 }
  0xcf   : > { %v658_v4 = vpop.permute.xlu1 %657  ;;  %v656_v8 = vpop.permute.xlu0 %655 }
  0xd0   : > { %v832_v24 = vsel %vm822_vm4, %v815_v23, %v656_v8  ;;  %v834_v29 = vsel %vm822_vm4, %v817_v1, %v658_v4 }
  0xd3   : > { %v679_v5 = vpop.permute.xlu1 %678  ;;  %v677_v16 = vpop.permute.xlu0 %676 }
  0xd4   : > { %v849_v25 = vsel %vm839_vm5, %v832_v24, %v677_v16  ;;  %v851_v61 = vsel %vm839_vm5, %v834_v29, %v679_v5 }
  0xd7   : > { %v710_v17 = vpop.permute.xlu1 %709  ;;  %v708_v18 = vpop.permute.xlu0 %707 }
  0xd8   : > { %v866_v27 = vsel %vm856_vm6, %v849_v25, %v708_v18  ;;  %v868_v35 = vsel %vm856_vm6, %v851_v61, %v710_v17 }
  0xdb   : > { %v729_v19 = vpop.permute.xlu1 %728  ;;  %v727_v20 = vpop.permute.xlu0 %726 }
  0xdc   : > { %v883_v28 = vsel %vm873_vm7, %v866_v27, %v727_v20  ;;  %v885_v37 = vsel %vm873_vm7, %v868_v35, %v729_v19  ;;  %v2062_v35 = vld [vmem:[%s2828_s6 + $0x10] sm:$0xff]  }
  0xdf   : > { %v750_v21 = vpop.permute.xlu1 %749  ;;  %v748_v22 = vpop.permute.xlu0 %747 }
  0xe0   : > { %v900_v30 = vsel %vm890_vm8, %v883_v28, %v748_v22  ;;  %v902_v44 = vsel %vm890_vm8, %v885_v37, %v750_v21  ;;  %v2063_v37 = vld [vmem:[%s2828_s6 + $0x18] sm:$0xff]  }
  0xe3   : > { %v781_v6 = vpop.permute.xlu1 %780  ;;  %v779_v26 = vpop.permute.xlu0 %778 }
  0xe4   : > { %v917_v32 = vsel %vm907_vm9, %v900_v30, %v779_v26  ;;  %v919_v39 = vsel %vm907_vm9, %v902_v44, %v781_v6  ;;  %v2060_v30 = vld [vmem:[%s2828_s6] sm:$0xff]  }
  0xe5   : > { %1936 = vmatprep.subr.bf16.mxu0 %v2060_v30  ;;  %1968 = vmatprep.subr.bf16.mxu1 %v2060_v30  ;;  %v2064_v44 = vld [vmem:[%s2828_s6 + $0x20] sm:$0xff]  }
  0xe6   : > { %1937 = vmatpush3.bf16.msra.mxu0 %v2060_v30  ;;  %1976 = vmatpush3.bf16.msra.mxu1 %v2060_v30 }
  0xe7   : > { %v619_v31 = vpop.permute.xlu1 %618  ;;  %v798_v33 = vpop.permute.xlu0 %797 }
  0xe8   : > { %v934_v36 = vsel %vm924_vm10, %v917_v32, %v798_v33  ;;  %v819_v55 = vsel %vm805_vm3, %v2323_v41, %v619_v31  ;;  %v2061_v32 = vld [vmem:[%s2828_s6 + $0x8] sm:$0xff]  }
  0xe9   : > { %1928 = vmatprep.mubr.msk.bf16.mxu0 %vm968_vm11, %v934_v36  ;;  %1938 = vmatprep.subr.bf16.mxu0 %v2061_v32 }
  0xea   : > { %1969 = vmatprep.subr.bf16.mxu1 %v2061_v32  ;;  %1939 = vmatpush3.bf16.msra.mxu0 %v2061_v32 }
  0xeb   : > { %v621_v38 = vpop.permute.xlu1 %620  ;;  %v800_v40 = vpop.permute.xlu0 %799  ;;  %1977 = vmatpush3.bf16.msra.mxu1 %v2061_v32  ;;  %1940 = vmatprep.subr.bf16.mxu0 %v2062_v35 }
  0xec   : > { %v936_v43 = vsel %vm924_vm10, %v919_v39, %v800_v40  ;;  %v821_v57 = vsel %vm805_vm3, %v2330_v42, %v621_v38  ;;  %1970 = vmatprep.subr.bf16.mxu1 %v2062_v35  ;;  %v2065_v38 = vld [vmem:[%s2828_s6 + $0x28] sm:$0xff]   ;;  %v2066_v40 = vld [vmem:[%s2828_s6 + $0x30] sm:$0xff]  }
  0xed   : > { %1929 = vmatmul.mubr.msk.bf16.gmra.mrb[8].mxu0 %vm968_vm11, %v936_v43 }
  0xee   : > { %1941 = vmatpush3.bf16.msra.mxu0 %v2062_v35 }
  0xef   : > { %v662_v45 = vpop.permute.xlu1 %661  ;;  %v660_v47 = vpop.permute.xlu0 %659  ;;  %1978 = vmatpush3.bf16.msra.mxu1 %v2062_v35  ;;  %1942 = vmatprep.subr.bf16.mxu0 %v2063_v37 }
  0xf0   : > { %v838_v58 = vsel %vm822_vm4, %v821_v57, %v662_v45  ;;  %v836_v59 = vsel %vm822_vm4, %v819_v55, %v660_v47  ;;  %1971 = vmatprep.subr.bf16.mxu1 %v2063_v37 }
  0xf2   : > { %1943 = vmatpush3.bf16.msra.mxu0 %v2063_v37 }
  0xf3   : > { %v683_v48 = vpop.permute.xlu1 %682  ;;  %v681_v49 = vpop.permute.xlu0 %680  ;;  %1979 = vmatpush3.bf16.msra.mxu1 %v2063_v37  ;;  %1944 = vmatprep.subr.bf16.mxu0 %v2064_v44 }
  0xf4   : > { %v855_v60 = vsel %vm839_vm5, %v838_v58, %v683_v48  ;;  %v853_v63 = vsel %vm839_vm5, %v836_v59, %v681_v49  ;;  %1972 = vmatprep.subr.bf16.mxu1 %v2064_v44 }
  0xf6   : > { %1945 = vmatpush3.bf16.msra.mxu0 %v2064_v44 }
  0xf7   : > { %v714_v50 = vpop.permute.xlu1 %713  ;;  %v712_v34 = vpop.permute.xlu0 %711  ;;  %1980 = vmatpush3.bf16.msra.mxu1 %v2064_v44  ;;  %1946 = vmatprep.subr.bf16.mxu0 %v2065_v38 }
  0xf8   : > { %v872_v3 = vsel %vm856_vm6, %v855_v60, %v714_v50  ;;  %v870_v0 = vsel %vm856_vm6, %v853_v63, %v712_v34  ;;  %1973 = vmatprep.subr.bf16.mxu1 %v2065_v38  ;;  %v2067_v50 = vld [vmem:[%s2828_s6 + $0x38] sm:$0xff]  }
  0xfa   : > { %1947 = vmatpush3.bf16.msra.mxu0 %v2065_v38 }
  0xfb   : > { %v733_v51 = vpop.permute.xlu1 %732  ;;  %v731_v52 = vpop.permute.xlu0 %730  ;;  %1981 = vmatpush3.bf16.msra.mxu1 %v2065_v38  ;;  %1948 = vmatprep.subr.bf16.mxu0 %v2066_v40 }
  0xfc   : > { %v889_v10 = vsel %vm873_vm7, %v872_v3, %v733_v51  ;;  %v887_v42 = vsel %vm873_vm7, %v870_v0, %v731_v52  ;;  %1974 = vmatprep.subr.bf16.mxu1 %v2066_v40 }
  0xfe   : > { %1949 = vmatpush3.bf16.msra.mxu0 %v2066_v40 }
  0xff   : > { %v754_v53 = vpop.permute.xlu1 %753  ;;  %v752_v54 = vpop.permute.xlu0 %751  ;;  %1982 = vmatpush3.bf16.msra.mxu1 %v2066_v40  ;;  %1950 = vmatprep.subr.bf16.mxu0 %v2067_v50 }
 0x100   : > { %v906_v41 = vsel %vm890_vm8, %v889_v10, %v754_v53  ;;  %v904_v11 = vsel %vm890_vm8, %v887_v42, %v752_v54  ;;  %1975 = vmatprep.subr.bf16.mxu1 %v2067_v50 }
 0x102   : > { %1951 = vmatpush3.bf16.msra.mxu0 %v2067_v50 }
 0x103   : > { %v785_v62 = vpop.permute.xlu1 %784  ;;  %v783_v7 = vpop.permute.xlu0 %782  ;;  %1983 = vmatpush3.bf16.msra.mxu1 %v2067_v50 }
 0x104   : > { %v923_v12 = vsel %vm907_vm9, %v906_v41, %v785_v62  ;;  %v921_v56 = vsel %vm907_vm9, %v904_v11, %v783_v7 }
 0x107   : > { %v804_v46 = vpop.permute.xlu1 %803  ;;  %v802_v13 = vpop.permute.xlu0 %801 }
 0x108   : > { %v940_v2 = vsel %vm924_vm10, %v923_v12, %v804_v46  ;;  %v938_v14 = vsel %vm924_vm10, %v921_v56, %v802_v13 }
 0x109   : > { %1932 = vmatprep.mubr.msk.bf16.mxu0 %vm968_vm11, %v938_v14 }
 0x10a   : > { %1933 = vmatmul.mubr.msk.bf16.gmra.mrb[12].mxu0 %vm968_vm11, %v940_v2 }
 0x180   : > { %v1922_v15 = vpop.f32.mrb[0].mxu0 }
 0x181   : > { %v2587_v4 = vadd.f32 %v1922_v15, %v2584_v9  ;;  %v1023_v8 = vpop.f32.mrb[1].mxu0 }
 0x182   : > { %v1923_v5 = vpop.f32.mrb[2].mxu0  ;;  %v2594_v18 = vadd.f32 %v2584_v9, %v1023_v8 }
 0x183   : > { %v2590_v16 = vadd.f32 %v1923_v5, %v2584_v9  ;;  %1090 = vadd.xlane.f32.xlu1 %v2587_v4  ;;  %v1026_v17 = vpop.f32.mrb[3].mxu0  ;;  %v1120_v20 = vmul.f32 %v2587_v4, %v2587_v4 }
 0x184   : > { %v2598_v19 = vadd.f32 %v2584_v9, %v1026_v17  ;;  %v1118_v22 = vmul.f32 %v2594_v18, %v2594_v18 }
 0x185   : > { %1092 = vadd.xlane.f32.xlu0 %v2590_v16  ;;  %v1121_v21 = vmul.f32 %v2590_v16, %v2590_v16 }
 0x186   : > { %v1119_v23 = vmul.f32 %v2598_v19, %v2598_v19 }
 0x187   : > { %1086 = vadd.xlane.f32.xlu1 %v2594_v18 }
 0x189   : > { %1088 = vadd.xlane.f32.xlu0 %v2598_v19 }
 0x18b   : > { %1138 = vadd.xlane.f32.xlu1 %v1120_v20 }
 0x18d   : > { %1140 = vadd.xlane.f32.xlu0 %v1121_v21 }
 0x18f   : > { %1134 = vadd.xlane.f32.xlu1 %v1118_v22 }
 0x191   : > { %1136 = vadd.xlane.f32.xlu0 %v1119_v23 }
 0x1a0   : > { %v1926_v24 = vpop.f32.mrb[4].mxu0 }
 0x1a1   : > { %v2611_v6 = vadd.f32 %v1926_v24, %v2584_v9  ;;  %v1039_v25 = vpop.f32.mrb[5].mxu0 }
 0x1a2   : > { %v1927_v26 = vpop.f32.mrb[6].mxu0  ;;  %v2617_v28 = vadd.f32 %v2584_v9, %v1039_v25 }
 0x1a3   : > { %1098 = vadd.xlane.f32.xlu0 %v2611_v6  ;;  %v1042_v27 = vpop.f32.mrb[7].mxu0  ;;  %v1124_v1 = vmul.f32 %v2611_v6, %v2611_v6  ;;  %v2627_v31 = vadd.f32 %v1927_v26, %v2584_v9 }
 0x1a4   : > { %v2620_v29 = vadd.f32 %v2584_v9, %v1042_v27  ;;  %v1122_v61 = vmul.f32 %v2617_v28, %v2617_v28 }
 0x1a5   : > { %1146 = vadd.xlane.f32.xlu1 %v1124_v1  ;;  %v1125_v33 = vmul.f32 %v2627_v31, %v2627_v31 }
 0x1a6   : > { %v1123_v36 = vmul.f32 %v2620_v29, %v2620_v29 }
 0x1a7   : > { %1094 = vadd.xlane.f32.xlu0 %v2617_v28 }
 0x1a9   : > { %1096 = vadd.xlane.f32.xlu1 %v2620_v29 }
 0x1ab   : > { %1100 = vadd.xlane.f32.xlu0 %v2627_v31 }
 0x1ad   : > { %1142 = vadd.xlane.f32.xlu1 %v1122_v61 }
 0x1af   : > { %1148 = vadd.xlane.f32.xlu0 %v1125_v33 }
 0x1b3   : > { %1144 = vadd.xlane.f32.xlu0 %v1123_v36 }
 0x1c0   : > { %v1930_v39 = vpop.f32.mrb[8].mxu0 }
 0x1c1   : > { %v2656_v43 = vadd.f32 %v1930_v39, %v2584_v9  ;;  %v1055_v45 = vpop.f32.mrb[9].mxu0  ;;  %v2710_v39 = vld [vmem:[%s2826_s4] ss:$0 sm:$0xff] }
 0x1c2   : > { %v1931_v47 = vpop.f32.mrb[10].mxu0  ;;  %v2666_v34 = vadd.f32 %v2584_v9, %v1055_v45 }
 0x1c3   : > { %v2659_v48 = vadd.f32 %v1931_v47, %v2584_v9  ;;  %1106 = vadd.xlane.f32.xlu1 %v2656_v43  ;;  %v1058_v49 = vpop.f32.mrb[11].mxu0  ;;  %v1128_v52 = vmul.f32 %v2656_v43, %v2656_v43 }
 0x1c4   : > { %v2670_v51 = vadd.f32 %v2584_v9, %v1058_v49  ;;  %v1126_v54 = vmul.f32 %v2666_v34, %v2666_v34  ;;  %v2716_v49 = vld [vmem:[%s2827_s5] ss:$0 sm:$0xff] }
 0x1c5   : > { %1108 = vadd.xlane.f32.xlu0 %v2659_v48  ;;  %v1129_v53 = vmul.f32 %v2659_v48, %v2659_v48 }
 0x1c6   : > { %v1127_v57 = vmul.f32 %v2670_v51, %v2670_v51 }
 0x1c7   : > { %1102 = vadd.xlane.f32.xlu1 %v2666_v34 }
 0x1c9   : > { %1104 = vadd.xlane.f32.xlu0 %v2670_v51 }
 0x1cb   : > { %1154 = vadd.xlane.f32.xlu1 %v1128_v52 }
 0x1cd   : > { %1156 = vadd.xlane.f32.xlu0 %v1129_v53 }
 0x1cf   : > { %1150 = vadd.xlane.f32.xlu1 %v1126_v54 }
 0x1d1   : > { %1152 = vadd.xlane.f32.xlu0 %v1127_v57 }
 0x1dd   : > { %v1934_v55 = vpop.f32.mrb[12].mxu0 }
 0x1de   : > { %v2683_v58 = vadd.f32 %v1934_v55, %v2584_v9  ;;  %v1071_v59 = vpop.f32.mrb[13].mxu0 }
 0x1df   : > { %v1935_v60 = vpop.f32.mrb[14].mxu0  ;;  %v2690_v3 = vadd.f32 %v2584_v9, %v1071_v59 }
 0x1e0   : > { %v2686_v62 = vadd.f32 %v1935_v60, %v2584_v9  ;;  %1114 = vadd.xlane.f32.xlu1 %v2683_v58  ;;  %v1074_v63 = vpop.f32.mrb[15].mxu0  ;;  %v1132_v42 = vmul.f32 %v2683_v58, %v2683_v58 }
 0x1e1   : > { %v2694_v7 = vadd.f32 %v2584_v9, %v1074_v63  ;;  %v1130_v0 = vmul.f32 %v2690_v3, %v2690_v3 }
 0x1e2   : > { %1116 = vadd.xlane.f32.xlu0 %v2686_v62  ;;  %v1133_v41 = vmul.f32 %v2686_v62, %v2686_v62 }
 0x1e3   : > { %v1131_v10 = vmul.f32 %v2694_v7, %v2694_v7 }
 0x1e4   : > { %1110 = vadd.xlane.f32.xlu1 %v2690_v3 }
 0x1e6   : > { %1112 = vadd.xlane.f32.xlu0 %v2694_v7 }
 0x1e8   : > { %1158 = vadd.xlane.f32.xlu1 %v1130_v0 }
 0x1ea   : > { %1160 = vadd.xlane.f32.xlu0 %v1131_v10 }
 0x1ec   : > { %1162 = vadd.xlane.f32.xlu1 %v1132_v42 }
 0x1ee   : > { %1164 = vadd.xlane.f32.xlu0 %v1133_v41 }
 0x210   : > { %v1091_v11 = vpop.xlane.xlu1 %1090 }
 0x211   : > { %v1168_v56 = vmul.f32 0.16666667, %v1091_v11 }
 0x212   : > { %v1093_v12 = vpop.xlane.xlu0 %1092 }
 0x213   : > { %v1169_v13 = vmul.f32 0.16666667, %v1093_v12  ;;  %v1200_v9 = vmul.f32 %v1168_v56, %v1168_v56  ;;  %v1232_v44 = vsub.f32 %v2587_v4, %v1168_v56 }
 0x214   : > { %v1087_v46 = vpop.xlane.xlu1 %1086 }
 0x215   : > { %v1166_v15 = vmul.f32 0.16666667, %v1087_v46  ;;  %v1201_v20 = vmul.f32 %v1169_v13, %v1169_v13  ;;  %v1233_v40 = vsub.f32 %v2590_v16, %v1169_v13 }
 0x216   : > { %v1089_v2 = vpop.xlane.xlu0 %1088 }
 0x217   : > { %v1167_v5 = vmul.f32 0.16666667, %v1089_v2  ;;  %v1198_v24 = vmul.f32 %v1166_v15, %v1166_v15  ;;  %v1230_v50 = vsub.f32 %v2594_v18, %v1166_v15 }
 0x218   : > { %v1139_v14 = vpop.xlane.xlu1 %1138 }
 0x219   : > { %v1184_v8 = vmul.f32 0.16666667, %v1139_v14  ;;  %v1199_v1 = vmul.f32 %v1167_v5, %v1167_v5  ;;  %v1231_v54 = vsub.f32 %v2598_v19, %v1167_v5 }
 0x21a   : > { %v1141_v17 = vpop.xlane.xlu0 %1140 }
 0x21b   : > { %v1216_v21 = vsub.f32 %v1184_v8, %v1200_v9  ;;  %v1185_v22 = vmul.f32 0.16666667, %v1141_v17 }
 0x21c   : > { %v1135_v23 = vpop.xlane.xlu1 %1134 }
 0x21d   : > { %v1248_v25 = vadd.f32 1e-05, %v1216_v21  ;;  %v1217_v26 = vsub.f32 %v1185_v22, %v1201_v20  ;;  %v1182_v27 = vmul.f32 0.16666667, %v1135_v23 }
 0x21e   : > { %v1137_v30 = vpop.xlane.xlu0 %1136 }
 0x21f   : > { %2068 = vrsqrt.f32 %v1248_v25  ;;  %v1249_v61 = vadd.f32 1e-05, %v1217_v26  ;;  %v1214_v32 = vsub.f32 %v1182_v27, %v1198_v24  ;;  %v1183_v33 = vmul.f32 0.16666667, %v1137_v30 }
 0x221   : > { %2070 = vrsqrt.f32 %v1249_v61  ;;  %v1246_v35 = vadd.f32 1e-05, %v1214_v32  ;;  %v1215_v36 = vsub.f32 %v1183_v33, %v1199_v1 }
 0x223   : > { %2072 = vrsqrt.f32 %v1246_v35  ;;  %v1247_v37 = vadd.f32 1e-05, %v1215_v36 }
 0x225   : > { %2074 = vrsqrt.f32 %v1247_v37 }
 0x229   : > { %v2069_v38 = vpop.eup %2068 }
 0x22a   : > { %v1280_v45 = vmul.f32 %v2069_v38, %v1232_v44 }
 0x22b   : > { %v2071_v47 = vpop.eup %2070 }
 0x22c   : > { %v1303_v52 = vmul.f32 %v2710_v39, %v1280_v45  ;;  %v1281_v4 = vmul.f32 %v2071_v47, %v1233_v40 }
 0x22d   : > { %v2073_v53 = vpop.eup %2072 }
 0x22e   : > { %v1304_v57 = vmul.f32 %v2710_v39, %v1281_v4  ;;  %v1278_v55 = vmul.f32 %v2073_v53, %v1230_v50  ;;  %v1326_v16 = vadd.f32 %v2716_v49, %v1303_v52 }
 0x22f   : > { %v2075_v59 = vpop.eup %2074 }
 0x230   : > { %v1099_v60 = vpop.xlane.xlu0 %1098  ;;  %v1279_v63 = vmul.f32 %v2075_v59, %v1231_v54  ;;  %v1301_v0 = vmul.f32 %v2710_v39, %v1278_v55  ;;  %v1327_v10 = vadd.f32 %v2716_v49, %v1304_v57  ;;  %v1358_v18 = vmul.f32 0.70710677, %v1326_v16 }
 0x231   : > { %v1172_v42 = vmul.f32 0.16666667, %v1099_v60  ;;  %v1342_v60 = vmul.f32 0.5, %v1326_v16 }
 0x232   : > { %v1147_v41 = vpop.xlane.xlu1 %1146  ;;  %v1302_v11 = vmul.f32 %v2710_v39, %v1279_v63  ;;  %v1324_v12 = vadd.f32 %v2716_v49, %v1301_v0  ;;  %v1359_v19 = vmul.f32 0.70710677, %v1327_v10  ;;  %v1343_v4 = vmul.f32 0.5, %v1327_v10 }
 0x233   : > { %v1204_v46 = vmul.f32 %v1172_v42, %v1172_v42  ;;  %v1188_v56 = vmul.f32 0.16666667, %v1147_v41  ;;  %v1236_v0 = vsub.f32 %v2611_v6, %v1172_v42 }
 0x234   : > { %v1095_v2 = vpop.xlane.xlu0 %1094  ;;  %v1325_v13 = vadd.f32 %v2716_v49, %v1302_v11  ;;  %v1356_v14 = vmul.f32 0.70710677, %v1324_v12  ;;  %2076 = verf.f32 %v1359_v19  ;;  %v1340_v52 = vmul.f32 0.5, %v1324_v12 }
 0x235   : > { %v1220_v9 = vsub.f32 %v1188_v56, %v1204_v46  ;;  %2078 = verf.f32 %v1358_v18  ;;  %v1170_v17 = vmul.f32 0.16666667, %v1095_v2 }
 0x236   : > { %v1097_v15 = vpop.xlane.xlu1 %1096  ;;  %v1357_v8 = vmul.f32 0.70710677, %v1325_v13  ;;  %2080 = verf.f32 %v1356_v14  ;;  %v1341_v57 = vmul.f32 0.5, %v1325_v13 }
 0x237   : > { %v1252_v5 = vadd.f32 1e-05, %v1220_v9  ;;  %v1202_v23 = vmul.f32 %v1170_v17, %v1170_v17  ;;  %v1171_v25 = vmul.f32 0.16666667, %v1097_v15  ;;  %v1234_v10 = vsub.f32 %v2617_v28, %v1170_v17 }
 0x238   : > { %v1101_v20 = vpop.xlane.xlu0 %1100  ;;  %2082 = verf.f32 %v1357_v8 }
 0x239   : > { %v1173_v21 = vmul.f32 0.16666667, %v1101_v20  ;;  %2084 = vrsqrt.f32 %v1252_v5  ;;  %v1203_v37 = vmul.f32 %v1171_v25, %v1171_v25  ;;  %v1235_v8 = vsub.f32 %v2620_v29, %v1171_v25 }
 0x23a   : > { %v1143_v22 = vpop.xlane.xlu1 %1142 }
 0x23b   : > { %v1186_v24 = vmul.f32 0.16666667, %v1143_v22  ;;  %v1205_v27 = vmul.f32 %v1173_v21, %v1173_v21  ;;  %v1237_v16 = vsub.f32 %v2627_v31, %v1173_v21 }
 0x23c   : > { %v1149_v26 = vpop.xlane.xlu0 %1148 }
 0x23d   : > { %v1218_v1 = vsub.f32 %v1186_v24, %v1202_v23  ;;  %v1189_v30 = vmul.f32 0.16666667, %v1149_v26 }
 0x23e   : > { %v2077_v61 = vpop.eup %2076 }
 0x23f   : > { %v2079_v32 = vpop.eup %2078  ;;  %v1250_v33 = vadd.f32 1e-05, %v1218_v1  ;;  %v1221_v35 = vsub.f32 %v1189_v30, %v1205_v27  ;;  %v1391_v38 = vadd.f32 1.0, %v2077_v61 }
 0x240   : > { %v2081_v36 = vpop.eup %2080  ;;  %v1145_v44 = vpop.xlane.xlu0 %1144  ;;  %v1390_v53 = vadd.f32 1.0, %v2079_v32 }
 0x241   : > { %2086 = vrsqrt.f32 %v1250_v33  ;;  %v1253_v40 = vadd.f32 1e-05, %v1221_v35  ;;  %v1187_v45 = vmul.f32 0.16666667, %v1145_v44  ;;  %v1388_v47 = vadd.f32 1.0, %v2081_v36 }
 0x242   : > { %v2083_v50 = vpop.eup %2082  ;;  %v1407_v63 = vmul.f32 %v1391_v38, %v1343_v4  ;;  %v1406_v19 = vmul.f32 %v1390_v53, %v1342_v60 }
 0x243   : > { %2088 = vrsqrt.f32 %v1253_v40  ;;  %v1219_v54 = vsub.f32 %v1187_v45, %v1203_v37  ;;  %v1389_v55 = vadd.f32 1.0, %v2083_v50  ;;  %v2085_v59 = vpop.eup %2084  ;;  %v1404_v41 = vmul.f32 %v1388_v47, %v1340_v52 }
 0x244   : > { %v1284_v56 = vmul.f32 %v2085_v59, %v1236_v0  ;;  %v1421_v2 = vpack.c.bf16 %v1407_v63, %v1406_v19 }
 0x245   : > { %v1251_v18 = vadd.f32 1e-05, %v1219_v54  ;;  %v1405_v11 = vmul.f32 %v1389_v55, %v1341_v57 }
 0x246   : > { %v1307_v13 = vmul.f32 %v2710_v39, %v1284_v56 }
 0x247   : > { %2090 = vrsqrt.f32 %v1251_v18  ;;  %v1420_v46 = vpack.c.bf16 %v1405_v11, %v1404_v41 }
 0x248   : > { %v1330_v15 = vadd.f32 %v2716_v49, %v1307_v13 }
 0x249   : > { %1952 = vmatprep.mubr.bf16.mxu0 %v1420_v46 }
 0x24a   : > { %1953 = vmatmul.mubr.bf16.vlgmr.msra.gmra.mrb[16].mxu0 %v1421_v2  ;;  %v1362_v21 = vmul.f32 0.70710677, %v1330_v15 }
 0x24b   : > { %v2087_v12 = vpop.eup %2086 }
 0x24c   : > { %v1282_v14 = vmul.f32 %v2087_v12, %v1234_v10 }
 0x24d   : > { %v2089_v9 = vpop.eup %2088 }
 0x24e   : > { %v1305_v6 = vmul.f32 %v2710_v39, %v1282_v14  ;;  %v1285_v42 = vmul.f32 %v2089_v9, %v1237_v16 }
 0x250   : > { %v1107_v5 = vpop.xlane.xlu1 %1106  ;;  %v1328_v20 = vadd.f32 %v2716_v49, %v1305_v6  ;;  %v1308_v28 = vmul.f32 %v2710_v39, %v1285_v42  ;;  %v1346_v6 = vmul.f32 0.5, %v1330_v15 }
 0x251   : > { %v2091_v17 = vpop.eup %2090  ;;  %v1176_v30 = vmul.f32 0.16666667, %v1107_v5 }
 0x252   : > { %v1109_v22 = vpop.xlane.xlu0 %1108  ;;  %v1283_v23 = vmul.f32 %v2091_v17, %v1235_v8  ;;  %v1360_v24 = vmul.f32 0.70710677, %v1328_v20  ;;  %v1331_v31 = vadd.f32 %v2716_v49, %v1308_v28  ;;  %v1344_v16 = vmul.f32 0.5, %v1328_v20 }
 0x253   : > { %v1177_v25 = vmul.f32 0.16666667, %v1109_v22  ;;  %v1208_v35 = vmul.f32 %v1176_v30, %v1176_v30  ;;  %v1240_v28 = vsub.f32 %v2656_v43, %v1176_v30 }
 0x254   : > { %v1103_v26 = vpop.xlane.xlu1 %1102  ;;  %v1306_v27 = vmul.f32 %v2710_v39, %v1283_v23  ;;  %v1363_v1 = vmul.f32 0.70710677, %v1331_v31  ;;  %2092 = verf.f32 %v1360_v24  ;;  %v1347_v12 = vmul.f32 0.5, %v1331_v31 }
 0x255   : > { %v1174_v36 = vmul.f32 0.16666667, %v1103_v26  ;;  %v1209_v40 = vmul.f32 %v1177_v25, %v1177_v25  ;;  %v1241_v24 = vsub.f32 %v2659_v48, %v1177_v25 }
 0x256   : > { %v1105_v61 = vpop.xlane.xlu0 %1104  ;;  %v1329_v29 = vadd.f32 %v2716_v49, %v1306_v27  ;;  %2094 = verf.f32 %v1363_v1 }
 0x257   : > { %2096 = verf.f32 %v1362_v21  ;;  %v1175_v44 = vmul.f32 0.16666667, %v1105_v61  ;;  %v1206_v52 = vmul.f32 %v1174_v36, %v1174_v36  ;;  %v1238_v31 = vsub.f32 %v2666_v34, %v1174_v36 }
 0x258   : > { %v1155_v32 = vpop.xlane.xlu1 %1154  ;;  %v1361_v33 = vmul.f32 0.70710677, %v1329_v29  ;;  %v1345_v14 = vmul.f32 0.5, %v1329_v29 }
 0x259   : > { %v1192_v37 = vmul.f32 0.16666667, %v1155_v32  ;;  %v1207_v57 = vmul.f32 %v1175_v44, %v1175_v44  ;;  %v1239_v29 = vsub.f32 %v2670_v51, %v1175_v44 }
 0x25a   : > { %v1157_v38 = vpop.xlane.xlu0 %1156  ;;  %2098 = verf.f32 %v1361_v33 }
 0x25b   : > { %v1224_v45 = vsub.f32 %v1192_v37, %v1208_v35  ;;  %v1193_v47 = vmul.f32 0.16666667, %v1157_v38 }
 0x25c   : > { %v1151_v50 = vpop.xlane.xlu1 %1150 }
 0x25d   : > { %v1256_v4 = vadd.f32 1e-05, %v1224_v45  ;;  %v1225_v53 = vsub.f32 %v1193_v47, %v1209_v40  ;;  %v1190_v54 = vmul.f32 0.16666667, %v1151_v50 }
 0x25e   : > { %v1153_v55 = vpop.xlane.xlu0 %1152  ;;  %v2093_v59 = vpop.eup %2092 }
 0x25f   : > { %2100 = vrsqrt.f32 %v1256_v4  ;;  %v1257_v60 = vadd.f32 1e-05, %v1225_v53  ;;  %v1222_v63 = vsub.f32 %v1190_v54, %v1206_v52  ;;  %v1191_v0 = vmul.f32 0.16666667, %v1153_v55 }
 0x260   : > { %v2095_v18 = vpop.eup %2094  ;;  %v1392_v2 = vadd.f32 1.0, %v2093_v59 }
 0x261   : > { %v2097_v41 = vpop.eup %2096  ;;  %2102 = vrsqrt.f32 %v1257_v60  ;;  %v1254_v11 = vadd.f32 1e-05, %v1222_v63  ;;  %v1223_v19 = vsub.f32 %v1191_v0, %v1207_v57  ;;  %v1395_v46 = vadd.f32 1.0, %v2095_v18 }
 0x262   : > { %v1394_v13 = vadd.f32 1.0, %v2097_v41  ;;  %v1408_v8 = vmul.f32 %v1392_v2, %v1344_v16 }
 0x263   : > { %2104 = vrsqrt.f32 %v1254_v11  ;;  %v1255_v56 = vadd.f32 1e-05, %v1223_v19  ;;  %v1411_v42 = vmul.f32 %v1395_v46, %v1347_v12 }
 0x264   : > { %v2099_v10 = vpop.eup %2098  ;;  %v1410_v17 = vmul.f32 %v1394_v13, %v1346_v6 }
 0x265   : > { %2106 = vrsqrt.f32 %v1255_v56  ;;  %v1393_v9 = vadd.f32 1.0, %v2099_v10 }
 0x266   : > { %v1423_v21 = vpack.c.bf16 %v1411_v42, %v1410_v17 }
 0x267   : > { %v1409_v5 = vmul.f32 %v1393_v9, %v1345_v14 }
 0x269   : > { %v2101_v22 = vpop.eup %2100  ;;  %v1422_v23 = vpack.c.bf16 %v1409_v5, %v1408_v8 }
 0x26a   : > { %v1288_v26 = vmul.f32 %v2101_v22, %v1240_v28 }
 0x26b   : > { %v2103_v27 = vpop.eup %2102  ;;  %1956 = vmatprep.mubr.bf16.mxu1 %v1422_v23 }
 0x26c   : > { %1957 = vmatmul.mubr.bf16.vlgmr.msra.gmra.mrb[0].mxu1 %v1423_v21  ;;  %v1289_v20 = vmul.f32 %v2103_v27, %v1241_v24  ;;  %v1311_v15 = vmul.f32 %v2710_v39, %v1288_v26 }
 0x26d   : > { %v2105_v1 = vpop.eup %2104  ;;  %v1115_v61 = vpop.xlane.xlu1 %1114 }
 0x26e   : > { %v1286_v43 = vmul.f32 %v2105_v1, %v1238_v31  ;;  %v1312_v30 = vmul.f32 %v2710_v39, %v1289_v20  ;;  %v1334_v32 = vadd.f32 %v2716_v49, %v1311_v15  ;;  %v1180_v53 = vmul.f32 0.16666667, %v1115_v61 }
 0x26f   : > { %v2107_v48 = vpop.eup %2106  ;;  %v1117_v25 = vpop.xlane.xlu0 %1116 }
 0x270   : > { %v1287_v33 = vmul.f32 %v2107_v48, %v1239_v29  ;;  %v1309_v37 = vmul.f32 %v2710_v39, %v1286_v43  ;;  %v1335_v34 = vadd.f32 %v2716_v49, %v1312_v30  ;;  %v1366_v40 = vmul.f32 0.70710677, %v1334_v32 }
 0x271   : > { %v1111_v35 = vpop.xlane.xlu1 %1110  ;;  %v1181_v55 = vmul.f32 0.16666667, %v1117_v25  ;;  %v1212_v11 = vmul.f32 %v1180_v53, %v1180_v53  ;;  %v1350_v20 = vmul.f32 0.5, %v1334_v32 }
 0x272   : > { %v1178_v36 = vmul.f32 0.16666667, %v1111_v35  ;;  %v1310_v38 = vmul.f32 %v2710_v39, %v1287_v33  ;;  %v1332_v51 = vadd.f32 %v2716_v49, %v1309_v37  ;;  %v1367_v44 = vmul.f32 0.70710677, %v1335_v34 }
 0x273   : > { %v1113_v45 = vpop.xlane.xlu0 %1112  ;;  %v1213_v2 = vmul.f32 %v1181_v55, %v1181_v55  ;;  %v1351_v23 = vmul.f32 0.5, %v1335_v34  ;;  %v1244_v35 = vsub.f32 %v2683_v58, %v1180_v53 }
 0x274   : > { %v1179_v47 = vmul.f32 0.16666667, %v1113_v45  ;;  %v1333_v50 = vadd.f32 %v2716_v49, %v1310_v38  ;;  %v1364_v4 = vmul.f32 0.70710677, %v1332_v51  ;;  %2108 = verf.f32 %v1367_v44 }
 0x275   : > { %v1159_v52 = vpop.xlane.xlu1 %1158  ;;  %v1210_v54 = vmul.f32 %v1178_v36, %v1178_v36  ;;  %2110 = verf.f32 %v1366_v40  ;;  %v1348_v21 = vmul.f32 0.5, %v1332_v51  ;;  %v1242_v31 = vsub.f32 %v2690_v3, %v1178_v36 }
 0x276   : > { %v1194_v57 = vmul.f32 0.16666667, %v1159_v52  ;;  %v1365_v60 = vmul.f32 0.70710677, %v1333_v50  ;;  %2112 = verf.f32 %v1364_v4  ;;  %v1211_v63 = vmul.f32 %v1179_v47, %v1179_v47 }
 0x277   : > { %v1161_v59 = vpop.xlane.xlu0 %1160  ;;  %v1349_v26 = vmul.f32 0.5, %v1333_v50  ;;  %v1243_v43 = vsub.f32 %v2694_v7, %v1179_v47  ;;  %v1245_v3 = vsub.f32 %v2686_v62, %v1181_v55 }
 0x278   : > { %v1226_v0 = vsub.f32 %v1194_v57, %v1210_v54  ;;  %v1195_v18 = vmul.f32 0.16666667, %v1161_v59  ;;  %2114 = verf.f32 %v1365_v60 }
 0x279   : > { %v1163_v41 = vpop.xlane.xlu1 %1162 }
 0x27a   : > { %v1258_v19 = vadd.f32 1e-05, %v1226_v0  ;;  %v1227_v46 = vsub.f32 %v1195_v18, %v1211_v63  ;;  %v1196_v56 = vmul.f32 0.16666667, %v1163_v41 }
 0x27b   : > { %v1165_v10 = vpop.xlane.xlu0 %1164 }
 0x27c   : > { %2116 = vrsqrt.f32 %v1258_v19  ;;  %v1259_v12 = vadd.f32 1e-05, %v1227_v46  ;;  %v1228_v13 = vsub.f32 %v1196_v56, %v1212_v11  ;;  %v1197_v16 = vmul.f32 0.16666667, %v1165_v10 }
 0x27e   : > { %2118 = vrsqrt.f32 %v1259_v12  ;;  %v1260_v14 = vadd.f32 1e-05, %v1228_v13  ;;  %v1229_v9 = vsub.f32 %v1197_v16, %v1213_v2  ;;  %v2109_v6 = vpop.eup %2108  ;;  %v1844_v16 = vld [vmem:[%s2829_s7] ss:$0 sm:$0xff] }
 0x27f   : > { %v2111_v42 = vpop.eup %2110  ;;  %v1399_v28 = vadd.f32 1.0, %v2109_v6 }
 0x280   : > { %2120 = vrsqrt.f32 %v1260_v14  ;;  %v1261_v8 = vadd.f32 1e-05, %v1229_v9  ;;  %v2113_v5 = vpop.eup %2112  ;;  %v1398_v24 = vadd.f32 1.0, %v2111_v42 }
 0x281   : > { %v1396_v17 = vadd.f32 1.0, %v2113_v5  ;;  %v1415_v15 = vmul.f32 %v1399_v28, %v1351_v23 }
 0x282   : > { %2122 = vrsqrt.f32 %v1261_v8  ;;  %v2115_v22 = vpop.eup %2114  ;;  %v1414_v30 = vmul.f32 %v1398_v24, %v1350_v20 }
 0x283   : > { %v1397_v27 = vadd.f32 1.0, %v2115_v22  ;;  %v1412_v61 = vmul.f32 %v1396_v17, %v1348_v21 }
 0x284   : > { %v1425_v37 = vpack.c.bf16 %v1415_v15, %v1414_v30 }
 0x285   : > { %v1413_v29 = vmul.f32 %v1397_v27, %v1349_v26 }
 0x286   : > { %v2117_v1 = vpop.eup %2116 }
 0x287   : > { %v1290_v48 = vmul.f32 %v2117_v1, %v1242_v31  ;;  %v1424_v33 = vpack.c.bf16 %v1413_v29, %v1412_v61 }
 0x288   : > { %v2119_v25 = vpop.eup %2118 }
 0x289   : > { %v1291_v34 = vmul.f32 %v2119_v25, %v1243_v43  ;;  %v1313_v38 = vmul.f32 %v2710_v39, %v1290_v48  ;;  %1960 = vmatprep.mubr.bf16.mxu1 %v1424_v33 }
 0x28a   : > { %v2121_v40 = vpop.eup %2120  ;;  %1961 = vmatmul.mubr.bf16.gmra.mrb[4].mxu1 %v1425_v37 }
 0x28b   : > { %v1292_v32 = vmul.f32 %v2121_v40, %v1244_v35  ;;  %v1314_v36 = vmul.f32 %v2710_v39, %v1291_v34  ;;  %v1336_v7 = vadd.f32 %v2716_v49, %v1313_v38 }
 0x28c   : > { %v2123_v45 = vpop.eup %2122 }
 0x28d   : > { %v1293_v51 = vmul.f32 %v2123_v45, %v1245_v3  ;;  %v1337_v44 = vadd.f32 %v2716_v49, %v1314_v36  ;;  %v1368_v47 = vmul.f32 0.70710677, %v1336_v7  ;;  %v1315_v58 = vmul.f32 %v2710_v39, %v1292_v32 }
 0x28e   : > { %v1352_v60 = vmul.f32 0.5, %v1336_v7 }
 0x28f   : > { %v1369_v50 = vmul.f32 0.70710677, %v1337_v44  ;;  %2124 = verf.f32 %v1368_v47  ;;  %v1316_v52 = vmul.f32 %v2710_v39, %v1293_v51  ;;  %v1338_v4 = vadd.f32 %v2716_v49, %v1315_v58 }
 0x290   : > { %v1353_v63 = vmul.f32 0.5, %v1337_v44 }
 0x291   : > { %2126 = verf.f32 %v1369_v50  ;;  %v1339_v62 = vadd.f32 %v2716_v49, %v1316_v52  ;;  %v1370_v53 = vmul.f32 0.70710677, %v1338_v4  ;;  %v1354_v49 = vmul.f32 0.5, %v1338_v4 }
 0x293   : > { %v1371_v54 = vmul.f32 0.70710677, %v1339_v62  ;;  %2128 = verf.f32 %v1370_v53  ;;  %v1355_v56 = vmul.f32 0.5, %v1339_v62 }
 0x295   : > { %2130 = verf.f32 %v1371_v54 }
 0x299   : > { %v2125_v57 = vpop.eup %2124 }
 0x29a   : > { %v1400_v55 = vadd.f32 1.0, %v2125_v57 }
 0x29b   : > { %v2127_v59 = vpop.eup %2126 }
 0x29c   : > { %v1401_v0 = vadd.f32 1.0, %v2127_v59  ;;  %v1416_v41 = vmul.f32 %v1400_v55, %v1352_v60 }
 0x29d   : > { %v2129_v18 = vpop.eup %2128 }
 0x29e   : > { %v1417_v39 = vmul.f32 %v1401_v0, %v1353_v63  ;;  %v1402_v19 = vadd.f32 1.0, %v2129_v18 }
 0x29f   : > { %v2131_v11 = vpop.eup %2130 }
 0x2a0   : > { %v1426_v46 = vpack.c.bf16 %v1417_v39, %v1416_v41  ;;  %v1403_v2 = vadd.f32 1.0, %v2131_v11  ;;  %v1418_v10 = vmul.f32 %v1402_v19, %v1354_v49 }
 0x2a2   : > { %1964 = vmatprep.mubr.bf16.mxu1 %v1426_v46  ;;  %v1419_v12 = vmul.f32 %v1403_v2, %v1355_v56 }
 0x2a4   : > { %v1427_v13 = vpack.c.bf16 %v1419_v12, %v1418_v10 }
 0x2a6   : > { %1965 = vmatmul.mubr.bf16.gmra.mrb[8].mxu1 %v1427_v13 }
 0x31d   : > { %v1954_v14 = vpop.f32.mrb[16].mxu0 }
 0x31e   : > { %v1542_v9 = vadd.f32 %v1954_v14, %v1844_v16  ;;  %v1533_v6 = vpop.f32.mrb[17].mxu0 }
 0x31f   : > { %v1534_v42 = vadd.f32 %v1844_v16, %v1533_v6  ;;  %v1955_v8 = vpop.f32.mrb[18].mxu0 }
 0x320   : > { %v1873_v5 = vpack.c.bf16 %v1542_v9, %v1542_v9  ;;  %v1545_v28 = vadd.f32 %v1955_v8, %v1844_v16  ;;  %v1536_v17 = vpop.f32.mrb[19].mxu0 }
 0x321   : > { %v1871_v22 = vpack.c.bf16 %v1534_v42, %v1534_v42  ;;  %v1537_v23 = vadd.f32 %v1844_v16, %v1536_v17 }
 0x322   : > { %1663 = vst.msk [vmem:[%s2773_s20 + $0x8] sm:$0xf] %vm1660_vm12, %v1873_v5  ;;  %v1874_v24 = vpack.c.bf16 %v1545_v28, %v1545_v28 }
 0x323   : > { %1661 = vst.msk [vmem:[%s2773_s20] sm:$0xf] %vm1660_vm12, %v1871_v22  ;;  %v1872_v21 = vpack.c.bf16 %v1537_v23, %v1537_v23 }
 0x324   : > { %1664 = vst.msk [vmem:[%s2773_s20 + $0xc] sm:$0xf] %vm1660_vm12, %v1874_v24 }
 0x325   : > { %1662 = vst.msk [vmem:[%s2773_s20 + $0x4] sm:$0xf] %vm1660_vm12, %v1872_v21 }
 0x33f   : > { %v1958_v26 = vpop.f32.mrb[0].mxu1 }
 0x340   : > { %v1558_v27 = vadd.f32 %v1958_v26, %v1844_v16  ;;  %v1549_v31 = vpop.f32.mrb[1].mxu1 }
 0x341   : > { %v1550_v20 = vadd.f32 %v1844_v16, %v1549_v31  ;;  %v1959_v15 = vpop.f32.mrb[2].mxu1 }
 0x342   : > { %v1877_v1 = vpack.c.bf16 %v1558_v27, %v1558_v27  ;;  %v1561_v61 = vadd.f32 %v1959_v15, %v1844_v16  ;;  %v1552_v29 = vpop.f32.mrb[3].mxu1 }
 0x343   : > { %v1875_v43 = vpack.c.bf16 %v1550_v20, %v1550_v20  ;;  %v1553_v30 = vadd.f32 %v1844_v16, %v1552_v29 }
 0x344   : > { %1667 = vst.msk [vmem:[%s2773_s20 + $0x18] sm:$0xf] %vm1660_vm12, %v1877_v1  ;;  %v1878_v48 = vpack.c.bf16 %v1561_v61, %v1561_v61 }
 0x345   : > { %1665 = vst.msk [vmem:[%s2773_s20 + $0x10] sm:$0xf] %vm1660_vm12, %v1875_v43  ;;  %v1876_v25 = vpack.c.bf16 %v1553_v30, %v1553_v30 }
 0x346   : > { %1668 = vst.msk [vmem:[%s2773_s20 + $0x1c] sm:$0xf] %vm1660_vm12, %v1878_v48 }
 0x347   : > { %1666 = vst.msk [vmem:[%s2773_s20 + $0x14] sm:$0xf] %vm1660_vm12, %v1876_v25 }
 0x35d   : > { %v1962_v33 = vpop.f32.mrb[4].mxu1 }
 0x35e   : > { %v1574_v35 = vadd.f32 %v1962_v33, %v1844_v16  ;;  %v1565_v37 = vpop.f32.mrb[5].mxu1 }
 0x35f   : > { %v1566_v34 = vadd.f32 %v1844_v16, %v1565_v37  ;;  %v1963_v38 = vpop.f32.mrb[6].mxu1 }
 0x360   : > { %v1881_v40 = vpack.c.bf16 %v1574_v35, %v1574_v35  ;;  %v1577_v3 = vadd.f32 %v1963_v38, %v1844_v16  ;;  %v1568_v32 = vpop.f32.mrb[7].mxu1 }
 0x361   : > { %v1879_v36 = vpack.c.bf16 %v1566_v34, %v1566_v34  ;;  %v1569_v7 = vadd.f32 %v1844_v16, %v1568_v32 }
 0x362   : > { %1671 = vst.msk [vmem:[%s2773_s20 + $0x28] sm:$0xf] %vm1660_vm12, %v1881_v40  ;;  %v1882_v45 = vpack.c.bf16 %v1577_v3, %v1577_v3 }
 0x363   : > { %1669 = vst.msk [vmem:[%s2773_s20 + $0x20] sm:$0xf] %vm1660_vm12, %v1879_v36  ;;  %v1880_v51 = vpack.c.bf16 %v1569_v7, %v1569_v7 }
 0x364   : > { %1672 = vst.msk [vmem:[%s2773_s20 + $0x2c] sm:$0xf] %vm1660_vm12, %v1882_v45 }
 0x365   : > { %1670 = vst.msk [vmem:[%s2773_s20 + $0x24] sm:$0xf] %vm1660_vm12, %v1880_v51 }
 0x379   : > { %v1966_v44 = vpop.f32.mrb[8].mxu1 }
 0x37a   : > { %v1590_v47 = vadd.f32 %v1966_v44, %v1844_v16  ;;  %v1581_v58 = vpop.f32.mrb[9].mxu1 }
 0x37b   : > { %v1582_v50 = vadd.f32 %v1844_v16, %v1581_v58  ;;  %v1967_v52 = vpop.f32.mrb[10].mxu1 }
 0x37c   : > { %v1885_v4 = vpack.c.bf16 %v1590_v47, %v1590_v47  ;;  %v1593_v62 = vadd.f32 %v1967_v52, %v1844_v16  ;;  %v1584_v53 = vpop.f32.mrb[11].mxu1 }
 0x37d   : > { %v1883_v54 = vpack.c.bf16 %v1582_v50, %v1582_v50  ;;  %v1585_v57 = vadd.f32 %v1844_v16, %v1584_v53 }
 0x37e   : > { %1675 = vst.msk [vmem:[%s2773_s20 + $0x38] sm:$0xf] %vm1660_vm12, %v1885_v4  ;;  %v1886_v55 = vpack.c.bf16 %v1593_v62, %v1593_v62 }
 0x37f   : > { %1673 = vst.msk [vmem:[%s2773_s20 + $0x30] sm:$0xf] %vm1660_vm12, %v1883_v54  ;;  %v1884_v59 = vpack.c.bf16 %v1585_v57, %v1585_v57 }
 0x380   : > { %1676 = vst.msk [vmem:[%s2773_s20 + $0x3c] sm:$0xf] %vm1660_vm12, %v1886_v55 }
 0x381   : > { %1674 = vst.msk [vmem:[%s2773_s20 + $0x34] sm:$0xf] %vm1660_vm12, %v1884_v59 }
 0x382 PF: > { %s18_s9 = sadd.s32 1, %s2170_s9   ;;  %s2831_s27 = smov %s2162_s29 }
 0x383   : > { %p15_p9 = scmp.ge.s32.totalorder %s18_s9, 6   ;;  %s2832_s28 = smov %s2166_s30 }
 0x384   : > { %s2833_s29 = smov %s2836_s10  ;;  %s2834_s30 = smov %s2840_s11 }
 0x385   :  { %17 = sbr.rel (!%p15_p9) target bundleno = 3 (0x3), region = 85 }

</bundles_post_ra>
